<compile_context>
chip_gen: v7x
topology: tpu7x:2x2x1
jax: 0.10.0
libtpu: 0.0.40
codegen_flags: <defaults>
</compile_context>

<pallas_src>
import jax
import jax.numpy as jnp
from jax.experimental import pallas as pl
from jax.experimental.pallas import tpu as pltpu


# ----------------------------------------------------------------------------
# Hardware-aware sizing helpers
# ----------------------------------------------------------------------------
def _tpu_vmem_params():
    """Returns (tiling_budget_bytes, compiler_vmem_limit_bytes_or_None, num_tcs)."""
    kind = ""
    try:
        kind = jax.devices()[0].device_kind.lower()
    except Exception:
        pass
    mib = 1024 * 1024
    if "v7" in kind or "7x" in kind:
        # Only 64 MiB VMEM per TC and 2 TCs per chip: modest tile budget with
        # headroom for kernel temporaries, and a limit well under physical.
        return 20 * mib, 40 * mib, 2
    if "v6" in kind:
        # 128 MiB physical VMEM, single TC.
        return 26 * mib, 64 * mib, 1
    if "v5" in kind:
        return 12 * mib, 32 * mib, 1
    # Unknown generation: conservative tiling, keep the compiler default.
    return 8 * mib, None, 1


def _compiler_params(dim_semantics, vmem_limit_bytes):
    kwargs = dict(dimension_semantics=dim_semantics)
    if vmem_limit_bytes is not None:
        kwargs["vmem_limit_bytes"] = int(vmem_limit_bytes)
    return pltpu.CompilerParams(**kwargs)


# ----------------------------------------------------------------------------
# Single-pass kernel: whole (B, C, HW) (or (B, HW, C)) tile per grid step
# ----------------------------------------------------------------------------
def _make_sem_kernel(channels_last, hw_total):
    inv_hw = 1.0 / float(hw_total)
    reduce_axis = 1 if channels_last else 2

    def kernel(x_ref, w1t_ref, w2t_ref, o_ref):
        # x_ref: (B, C, HW) or (B, HW, C) in native dtype.
        # w1t_ref: (C, Cr), w2t_ref: (Cr, C) -- VMEM resident, stored dtype.
        x = x_ref[...]

        # Squeeze: global average pool, f32 accumulation.
        y = jnp.sum(x, axis=reduce_axis, dtype=jnp.float32) * jnp.float32(inv_hw)  # (B, C)

        # Excitation: two 1x1 convs as MXU matmuls with f32 accumulation.
        h = jnp.maximum(
            jnp.dot(y, w1t_ref[...], preferred_element_type=jnp.float32), 0.0)     # (B, Cr)
        s = jax.nn.sigmoid(
            jnp.dot(h, w2t_ref[...], preferred_element_type=jnp.float32))          # (B, C)

        # Scale: per-channel gate broadcast over spatial, native dtype.
        g = s.astype(x.dtype)
        gate = g[:, None, :] if channels_last else g[:, :, None]
        o_ref[...] = (x * gate).astype(o_ref.dtype)

    return kernel


# ----------------------------------------------------------------------------
# Fallback kernel: HW-chunked two-pass (for very large single-sample slabs)
# ----------------------------------------------------------------------------
def _make_sem_hw_split_kernel(hw_total, chunk):
    inv_hw = 1.0 / float(hw_total)

    def kernel(x_ref, w1t_ref, w2t_ref, o_ref, sum_ref, gate_ref):
        # grid = (N, 2, n_chunks): axis 1 is the pass index, axis 2 the HW chunk.
        phase = pl.program_id(1)
        c_idx = pl.program_id(2)
        n_chunks = pl.num_programs(2)

        @pl.when(jnp.logical_and(phase == 0, c_idx == 0))
        def _():
            sum_ref[...] = jnp.zeros_like(sum_ref)

        @pl.when(phase == 0)
        def _():
            x = x_ref[...]                                           # (1, C, chunk)
            lane = jax.lax.broadcasted_iota(jnp.int32, x.shape, 2)
            valid = (c_idx * chunk + lane) < hw_total                # mask ragged tail
            xm = jnp.where(valid, x, jnp.zeros_like(x))
            sum_ref[...] += jnp.sum(xm, axis=-1, dtype=jnp.float32)  # (1, C)

        @pl.when(jnp.logical_and(phase == 0, c_idx == n_chunks - 1))
        def _():
            y = sum_ref[...] * jnp.float32(inv_hw)                   # (1, C)
            h = jnp.maximum(
                jnp.dot(y, w1t_ref[...], preferred_element_type=jnp.float32), 0.0)
            gate_ref[...] = jax.nn.sigmoid(
                jnp.dot(h, w2t_ref[...], preferred_element_type=jnp.float32))

        @pl.when(phase == 1)
        def _():
            x = x_ref[...]
            gate = gate_ref[...].astype(x.dtype)[:, :, None]         # (1, C, 1)
            o_ref[...] = (x * gate).astype(o_ref.dtype)

    return kernel


def _sem_forward_hw_split(x, w1t, w2t, hw, budget, vmem_limit):
    # TODO(synk): this fallback keeps the (C, HW) layout even when HW is not a
    # multiple of 128; a channels-last fallback variant would keep stores
    # unmasked for that case as well.
    N, C, H, W = x.shape
    Cr = w1t.shape[1]
    itemsize = jnp.dtype(x.dtype).itemsize
    x2 = x.reshape(N, C, hw)

    # Per-lane VMEM cost: in+out double-buffered (native dtype) + f32 temps.
    per_lane = C * itemsize * 4 + C * 4 * 2
    chunk = (budget // per_lane) // 128 * 128
    chunk = int(max(128, min(chunk, -(-hw // 128) * 128)))
    n_chunks = pl.cdiv(hw, chunk)

    out = pl.pallas_call(
        _make_sem_hw_split_kernel(hw, chunk),
        out_shape=jax.ShapeDtypeStruct((N, C, hw), x.dtype),
        grid_spec=pltpu.PrefetchScalarGridSpec(
            num_scalar_prefetch=0,
            grid=(N, 2, n_chunks),
            in_specs=[
                pl.BlockSpec((1, C, chunk), lambda n, p, c: (n, 0, c)),
                pl.BlockSpec((C, Cr), lambda n, p, c: (0, 0)),   # resident weights
                pl.BlockSpec((Cr, C), lambda n, p, c: (0, 0)),   # resident weights
            ],
            out_specs=pl.BlockSpec((1, C, chunk), lambda n, p, c: (n, 0, c)),
            scratch_shapes=[
                pltpu.VMEM((1, C), jnp.float32),   # running spatial sum
                pltpu.VMEM((1, C), jnp.float32),   # sigmoid gate
            ],
        ),
        compiler_params=_compiler_params(
            ("parallel", "arbitrary", "arbitrary"), vmem_limit),
        cost_estimate=pl.CostEstimate(
            flops=3 * N * C * hw + 4 * N * C * Cr,
            transcendentals=N * (C + Cr),
            bytes_accessed=3 * N * C * hw * itemsize),
    )(x2, w1t, w2t)
    return out.reshape(N, C, H, W)


# ----------------------------------------------------------------------------
# Public forward
# ----------------------------------------------------------------------------
def sem_forward(x, w1, w2, *, vmem_budget_bytes=None):
    """x: (N, C, H, W) NCHW; w1: (Cr, C) conv1 weight; w2: (C, Cr) conv2 weight."""
    N, C, H, W = x.shape
    Cr = w1.shape[0]
    hw = H * W
    itemsize = jnp.dtype(x.dtype).itemsize

    budget, vmem_limit, num_tc = _tpu_vmem_params()
    if vmem_budget_bytes is not None:
        budget = int(vmem_budget_bytes)

    w1t = w1.T          # (C, Cr)
    w2t = w2.T          # (Cr, C)

    # Per-batch-element VMEM cost of one single-pass grid step:
    # in + out tiles double-buffered (native dtype) plus headroom for the
    # in-kernel f32 temporaries (pooling partials, pre-store x*gate value).
    per_batch_io = C * hw * itemsize
    per_batch_vmem = 4 * per_batch_io + 2 * C * hw * 4

    if per_batch_vmem > budget:
        # Even one batch element's (C, HW) slab would blow the budget:
        # fall back to the HW-chunked two-pass kernel.
        return _sem_forward_hw_split(x, w1t, w2t, hw, budget, vmem_limit)

    # Layout: keep the lane (fast) axis a multiple of 128 so stores are
    # unmasked full-lane vst where possible.
    channels_last = (hw % 128 != 0) and (C % 128 == 0)
    # TODO(synk): when neither HW nor C is a multiple of 128, stores stay
    # masked; a padded-channel layout would fix that at the model level.

    # Batch-block sizing: as big as the budget allows, but keep >= 2 grid
    # steps per TensorCore when N allows, without fragmenting a single input
    # DMA below ~2 MiB.
    min_steps = 2 * num_tc
    b_cap = max(1, budget // per_batch_vmem)
    b_floor = max(1, (2 * 1024 * 1024) // per_batch_io)
    b_steps = max(1, N // min_steps)
    B = int(min(b_cap, max(b_floor, b_steps), N))

    n_steps = pl.cdiv(N, B)
    N_pad = n_steps * B

    x2 = x.reshape(N, C, hw)
    if channels_last:
        x2 = jnp.transpose(x2, (0, 2, 1))                 # (N, HW, C)
    if N_pad != N:
        x2 = jnp.pad(x2, ((0, N_pad - N), (0, 0), (0, 0)))

    blk = (B, hw, C) if channels_last else (B, C, hw)

    out = pl.pallas_call(
        _make_sem_kernel(channels_last, hw),
        out_shape=jax.ShapeDtypeStruct(x2.shape, x.dtype),
        grid_spec=pltpu.PrefetchScalarGridSpec(
            num_scalar_prefetch=0,
            grid=(n_steps,),
            in_specs=[
                pl.BlockSpec(blk, lambda n: (n, 0, 0)),
                pl.BlockSpec((C, Cr), lambda n: (0, 0)),   # resident weights
                pl.BlockSpec((Cr, C), lambda n: (0, 0)),   # resident weights
            ],
            out_specs=pl.BlockSpec(blk, lambda n: (n, 0, 0)),
        ),
        compiler_params=_compiler_params(("parallel",), vmem_limit),
        cost_estimate=pl.CostEstimate(
            flops=3 * N * C * hw + 4 * N * C * Cr,
            transcendentals=N * (C + Cr),
            bytes_accessed=2 * N * C * hw * itemsize),
    )(x2, w1t, w2t)

    if N_pad != N:
        out = out[:N]
    if channels_last:
        out = jnp.transpose(out, (0, 2, 1))
    return out.reshape(N, C, H, W)


def sem_reference(x, w1, w2):
    # Pure-JAX reference matching the PyTorch semantics.
    y = jnp.mean(x, axis=(2, 3))                                  # (N, C)
    h = jnp.maximum(jnp.einsum('rc,nc->nr', w1, y), 0.0)          # (N, Cr)
    s = jax.nn.sigmoid(jnp.einsum('cr,nr->nc', w2, h))            # (N, C)
    return x * s[:, :, None, None]


if __name__ == "__main__":
    def make_case(key, N, C, H, W, reduction=16):
        Cr = max(1, C // reduction)
        kx, k1, k2 = jax.random.split(key, 3)
        x = jax.random.normal(kx, (N, C, H, W), dtype=jnp.float32)
        # conv1.weight (Cr, C, 1, 1) -> (Cr, C); conv2.weight (C, Cr, 1, 1) -> (C, Cr)
        w1 = jax.random.normal(k1, (Cr, C), dtype=jnp.float32) * (1.0 / jnp.sqrt(C))
        w2 = jax.random.normal(k2, (C, Cr), dtype=jnp.float32) * (1.0 / jnp.sqrt(Cr))
        return x, w1, w2

    # Case 1: lane-dense (N, C, HW) main path; HW = 256 is a multiple of 128.
    x, w1, w2 = make_case(jax.random.PRNGKey(0), 4, 128, 16, 16)
    out = jax.block_until_ready(sem_forward(x, w1, w2))
    ref = sem_reference(x, w1, w2)
    assert out.shape == x.shape
    assert jnp.allclose(out, ref, atol=1e-5, rtol=1e-5)

    # Case 2: channels-last path (HW=100 not a multiple of 128, C=128 is) with
    # a non-divisor batch (N=3, B=2 via a forced small budget) -> exercises
    # the cdiv/padding path.
    x, w1, w2 = make_case(jax.random.PRNGKey(1), 3, 128, 10, 10)
    out = jax.block_until_ready(sem_forward(x, w1, w2, vmem_budget_bytes=640_000))
    ref = sem_reference(x, w1, w2)
    assert out.shape == x.shape
    assert jnp.allclose(out, ref, atol=1e-5, rtol=1e-5)

    # Case 3: HW-chunked two-pass fallback (forced tiny budget), with a ragged
    # last HW chunk (HW = 324) that exercises the lane masking.
    x, w1, w2 = make_case(jax.random.PRNGKey(2), 2, 64, 18, 18, reduction=8)
    out = jax.block_until_ready(sem_forward(x, w1, w2, vmem_budget_bytes=100_000))
    ref = sem_reference(x, w1, w2)
    assert out.shape == x.shape
    assert jnp.allclose(out, ref, atol=1e-5, rtol=1e-5)

    print("KERNEL_OK")
</pallas_src>

<mosaic_0001>
module attributes {stable_mosaic.version = 11 : i64} {
  func.func @kernel(%arg0: i32, %arg1: memref<4x128x256xf32, #tpu.memory_space<vmem>>, %arg2: memref<128x8xf32, #tpu.memory_space<vmem>>, %arg3: memref<8x128xf32, #tpu.memory_space<vmem>>, %arg4: memref<4x128x256xf32, #tpu.memory_space<vmem>>) attributes {dimension_semantics = [#tpu.dimension_semantics<parallel>], iteration_bounds = array<i64: 1>, scalar_prefetch = 0 : i64, scratch_operands = 0 : i64, tpu.core_type = #tpu.core_type<tc>, window_params = [{transform_indices = @transform_0, window_bounds = array<i64: 4, 128, 256>}, {pipeline_mode = #tpu.pipeline_mode<synchronous>, transform_indices = @transform_1, window_bounds = array<i64: 128, 8>}, {pipeline_mode = #tpu.pipeline_mode<synchronous>, transform_indices = @transform_2, window_bounds = array<i64: 8, 128>}, {transform_indices = @transform_3, window_bounds = array<i64: 4, 128, 256>}]} {
    %c0 = arith.constant 0 : index
    %c0_0 = arith.constant 0 : index
    %c0_1 = arith.constant 0 : index
    %0 = vector.load %arg1[%c0, %c0_0, %c0_1] : memref<4x128x256xf32, #tpu.memory_space<vmem>>, vector<4x128x256xf32>
    %cst = arith.constant dense<0.000000e+00> : vector<4x128xf32>
    %1 = vector.multi_reduction <add>, %0, %cst [2] : vector<4x128x256xf32> to vector<4x128xf32>
    %cst_2 = arith.constant 3.906250e-03 : f32
    %2 = vector.broadcast %cst_2 : f32 to vector<4x128xf32>
    %3 = arith.mulf %1, %2 : vector<4x128xf32>
    %c0_3 = arith.constant 0 : index
    %c0_4 = arith.constant 0 : index
    %4 = vector.load %arg2[%c0_3, %c0_4] : memref<128x8xf32, #tpu.memory_space<vmem>>, vector<128x8xf32>
    %cst_5 = arith.constant dense<0.000000e+00> : vector<4x8xf32>
    %5 = tpu.matmul %3, %4, %cst_5 {dimension_numbers = #tpu.dot_dimension_numbers<[1], [0], [0], [1], [0, 0, 1, 1], [], []>} : vector<4x128xf32>, vector<128x8xf32>, vector<4x8xf32> -> vector<4x8xf32>
    %cst_6 = arith.constant 0.000000e+00 : f32
    %6 = vector.broadcast %cst_6 : f32 to vector<4x8xf32>
    %7 = arith.maximumf %5, %6 : vector<4x8xf32>
    %c0_7 = arith.constant 0 : index
    %c0_8 = arith.constant 0 : index
    %8 = vector.load %arg3[%c0_7, %c0_8] : memref<8x128xf32, #tpu.memory_space<vmem>>, vector<8x128xf32>
    %cst_9 = arith.constant dense<0.000000e+00> : vector<4x128xf32>
    %9 = tpu.matmul %7, %8, %cst_9 {dimension_numbers = #tpu.dot_dimension_numbers<[1], [0], [0], [1], [0, 0, 1, 1], [], []>} : vector<4x8xf32>, vector<8x128xf32>, vector<4x128xf32> -> vector<4x128xf32>
    %10 = arith.negf %9 : vector<4x128xf32>
    %11 = math.exp %10 : vector<4x128xf32>
    %cst_10 = arith.constant 1.000000e+00 : f32
    %12 = vector.broadcast %cst_10 : f32 to vector<4x128xf32>
    %13 = arith.addf %12, %11 : vector<4x128xf32>
    %14 = arith.divf %12, %13 : vector<4x128xf32>
    %15 = vector.shape_cast %14 : vector<4x128xf32> to vector<4x128x1xf32>
    %16 = vector.broadcast %15 : vector<4x128x1xf32> to vector<4x128x256xf32>
    %17 = arith.mulf %0, %16 : vector<4x128x256xf32>
    %c0_11 = arith.constant 0 : index
    %c0_12 = arith.constant 0 : index
    %c0_13 = arith.constant 0 : index
    %18 = vector.load %arg4[%c0_11, %c0_12, %c0_13] : memref<4x128x256xf32, #tpu.memory_space<vmem>>, vector<4x128x256xf32>
    tpu.vector_store %arg4[%c0_11, %c0_12, %c0_13], %17 {strides = array<i32>} : memref<4x128x256xf32, #tpu.memory_space<vmem>>, vector<4x128x256xf32>,
    return
  }
  func.func @transform_0(%arg0: i32) -> (i32, i32, i32) {
    %c0_i32 = arith.constant 0 : i32
    %c0_i32_0 = arith.constant 0 : i32
    %c0_i32_1 = arith.constant 0 : i32
    return %arg0, %c0_i32, %c0_i32_0 : i32, i32, i32
  }
  func.func @transform_1(%arg0: i32) -> (i32, i32) {
    %c0_i32 = arith.constant 0 : i32
    %c0_i32_0 = arith.constant 0 : i32
    %c0_i32_1 = arith.constant 0 : i32
    return %c0_i32, %c0_i32_0 : i32, i32
  }
  func.func @transform_2(%arg0: i32) -> (i32, i32) {
    %c0_i32 = arith.constant 0 : i32
    %c0_i32_0 = arith.constant 0 : i32
    %c0_i32_1 = arith.constant 0 : i32
    return %c0_i32, %c0_i32_0 : i32, i32
  }
  func.func @transform_3(%arg0: i32) -> (i32, i32, i32) {
    %c0_i32 = arith.constant 0 : i32
    %c0_i32_0 = arith.constant 0 : i32
    %c0_i32_1 = arith.constant 0 : i32
    return %arg0, %c0_i32, %c0_i32_0 : i32, i32, i32
  }
}

</mosaic_0001>

<bundles_post_ra>
// kernel: tpu_custom_call.1
= control target key start
LH: loop header
LB: loop body
LE: loop exit
PB: predicated region body
PF: predicated region fallthrough
CT: control target
= control target key end

     0   :  { %8 = vsyncpa [#allocation3], 0  ;;  %s2281_s0 = inlined_call_operand.hbm [shape: f32[4,128,256], index: 0, kind: input, shape index: {}]   ;;  %s2282_s1 = inlined_call_operand.vmem [shape: f32[128,8], index: 1, kind: input, shape index: {}]   ;;  %s2283_s2 = inlined_call_operand.vmem [shape: f32[8,128], index: 2, kind: input, shape index: {}]   ;;  %s2284_s3 = inlined_call_operand.hbm [shape: f32[4,128,256], index: 3, kind: output, shape index: {}]  }
   0x1   :  { %9 = vsyncpa [#allocation4], 0  ;;  %s1813_s12 = smov [#allocation2]   ;;  %s1765_s16 = scalar_lea.hbm %s2281_s0, 16384 }
   0x2   :  { %s15_s13 = sshll.u32 %s1813_s12, 4  ;;  %p1766_p0 = scmp.ne.s32.totalorder %s2281_s0, %s1765_s16  ;;  %s16_s13 = int_to_ptr.vmem [resolvable:$true] %s15_s13 }
   0x3   :  { %p1769_p1 = scmp.lt.u32.totalorder %s1765_s16, %s2281_s0 }
   0x5   :  { %p1771_p2 = pnand %p1769_p1, %p1766_p0 }
   0x7   :  { %1774 = shalt.err (!%p1771_p2)
}
   0x8   :  { %s1775_s21 = scalar_lea.vmem %s16_s13, 16384  ;;  %p1780_p4 = scmp.lt.s32.totalorder %s16_s13, %s16_s13 }
   0x9   :  { %p1776_p3 = scmp.ne.s32.totalorder %s16_s13, %s1775_s21  ;;  %p1781_p5 = scmp.lt.s32.totalorder %s1775_s21, %s1775_s21 }
   0xb   :  { %p1782_p6 = por %p1781_p5, %p1780_p4 }
   0xd   :  { %p1783_p7 = pnand %p1782_p6, %p1776_p3 }
   0xf   :  { %1786 = shalt.err (!%p1783_p7)
}
  0x10   :  { %s1814_s22 = smov 256   ;;  %s1815_s23 = smov 16  }
  0x11   :  { %21 = dma.hbm_to_vmem [thread:$0]  %s2281_s0, 16384, %s16_s13, [#allocation3], %s1814_s22, %s1814_s22, %s1815_s23  }
  0x12   :  { %1809 = dma.done.wait [#allocation3], 16384  }
  0x13   :  { %1810 = vsyncadd [#allocation3], 4294950912  ;;  %v61_v0 = vld [vmem:[#allocation2 + $0x100] sm:$0xff]  ;;  %v62_v1 = vld [vmem:[#allocation2 + $0x108] sm:$0xff]  ;;  %vm1817_vm0 = vmmov 0   ;;  %vm504_vm1 = vcmask 130112  }
  0x14   :  { %v29_v2 = vld [vmem:[#allocation2] sm:$0xff]  ;;  %v205_v3 = vadd.f32 %v62_v1, %v61_v0  ;;  %v30_v4 = vld [vmem:[#allocation2 + $0x8] sm:$0xff]  ;;  %v63_v5 = vld [vmem:[#allocation2 + $0x110] sm:$0xff]  ;;  %vm511_vm2 = vcmask 195712   ;;  %vm518_vm3 = vcmask 261312   ;;  %vm525_vm4 = vcmask 326912  }
  0x15   :  { %v64_v6 = vld [vmem:[#allocation2 + $0x118] sm:$0xff]  ;;  %v157_v7 = vadd.f32 %v30_v4, %v29_v2  ;;  %v31_v8 = vld [vmem:[#allocation2 + $0x10] sm:$0xff]  ;;  %v65_v12 = vld [vmem:[#allocation2 + $0x120] sm:$0xff]  ;;  %vm532_vm5 = vcmask 392512   ;;  %vm539_vm6 = vcmask 458112   ;;  %vm546_vm7 = vcmask 523712  }
  0x16   :  { %v32_v9 = vld [vmem:[#allocation2 + $0x18] sm:$0xff]  ;;  %206 = vadd.xlane.f32.xlu1 %v205_v3  ;;  %v208_v10 = vadd.f32 %v64_v6, %v63_v5  ;;  %v66_v13 = vld [vmem:[#allocation2 + $0x128] sm:$0xff]  ;;  %v33_v14 = vld [vmem:[#allocation2 + $0x20] sm:$0xff]  ;;  %vm553_vm8 = vcmask 589312   ;;  %vm560_vm9 = vcmask 654912   ;;  %vm567_vm10 = vcmask 720512  }
  0x17   :  { %158 = vadd.xlane.f32.xlu0 %v157_v7  ;;  %v160_v11 = vadd.f32 %v32_v9, %v31_v8  ;;  %v34_v15 = vld [vmem:[#allocation2 + $0x28] sm:$0xff]  ;;  %v211_v16 = vadd.f32 %v66_v13, %v65_v12  ;;  %v95_v18 = vld [vmem:[#allocation2 + $0x210] sm:$0xff]  ;;  %v96_v19 = vld [vmem:[#allocation2 + $0x218] sm:$0xff]  ;;  %vm574_vm11 = vcmask 786112   ;;  %vm581_vm12 = vcmask 851712  }
  0x18   :  { %v163_v17 = vadd.f32 %v34_v15, %v33_v14  ;;  %v93_v20 = vld [vmem:[#allocation2 + $0x200] sm:$0xff]  ;;  %v94_v21 = vld [vmem:[#allocation2 + $0x208] sm:$0xff]  ;;  %v256_v22 = vadd.f32 %v96_v19, %v95_v18  ;;  %v67_v24 = vld [vmem:[#allocation2 + $0x130] sm:$0xff]  ;;  %vm588_vm13 = vcmask 917312   ;;  %vm595_vm14 = vcmask 982912  }
  0x19   :  { %v253_v23 = vadd.f32 %v94_v21, %v93_v20  ;;  %v68_v25 = vld [vmem:[#allocation2 + $0x138] sm:$0xff]  ;;  %v35_v26 = vld [vmem:[#allocation2 + $0x30] sm:$0xff]  ;;  %v125_v30 = vld [vmem:[#allocation2 + $0x300] sm:$0xff]  ;;  %vm602_vm15 = vcmask 1048512  }
  0x1a   :  { %209 = vadd.xlane.f32.xlu1 %v208_v10  ;;  %v36_v27 = vld [vmem:[#allocation2 + $0x38] sm:$0xff]  ;;  %v214_v28 = vadd.f32 %v68_v25, %v67_v24  ;;  %v126_v31 = vld [vmem:[#allocation2 + $0x308] sm:$0xff]  ;;  %v97_v32 = vld [vmem:[#allocation2 + $0x220] sm:$0xff] }
  0x1b   :  { %161 = vadd.xlane.f32.xlu0 %v160_v11  ;;  %v166_v29 = vadd.f32 %v36_v27, %v35_v26  ;;  %v98_v33 = vld [vmem:[#allocation2 + $0x228] sm:$0xff]  ;;  %v301_v34 = vadd.f32 %v126_v31, %v125_v30  ;;  %v37_v36 = vld [vmem:[#allocation2 + $0x40] sm:$0xff]  ;;  %v127_v38 = vld [vmem:[#allocation2 + $0x310] sm:$0xff] }
  0x1c   :  { %v259_v35 = vadd.f32 %v98_v33, %v97_v32  ;;  %v38_v37 = vld [vmem:[#allocation2 + $0x48] sm:$0xff]  ;;  %v128_v39 = vld [vmem:[#allocation2 + $0x318] sm:$0xff]  ;;  %v99_v42 = vld [vmem:[#allocation2 + $0x230] sm:$0xff] }
  0x1d   :  { %v169_v40 = vadd.f32 %v38_v37, %v37_v36  ;;  %v304_v41 = vadd.f32 %v128_v39, %v127_v38  ;;  %v100_v43 = vld [vmem:[#allocation2 + $0x238] sm:$0xff]  ;;  %v69_v44 = vld [vmem:[#allocation2 + $0x140] sm:$0xff]  ;;  %v70_v45 = vld [vmem:[#allocation2 + $0x148] sm:$0xff] }
  0x1e   :  { %212 = vadd.xlane.f32.xlu1 %v211_v16  ;;  %v262_v46 = vadd.f32 %v100_v43, %v99_v42  ;;  %v217_v47 = vadd.f32 %v70_v45, %v69_v44  ;;  %v39_v48 = vld [vmem:[#allocation2 + $0x50] sm:$0xff]  ;;  %v40_v49 = vld [vmem:[#allocation2 + $0x58] sm:$0xff]  ;;  %v129_v50 = vld [vmem:[#allocation2 + $0x320] sm:$0xff] }
  0x1f   :  { %164 = vadd.xlane.f32.xlu0 %v163_v17  ;;  %v130_v51 = vld [vmem:[#allocation2 + $0x328] sm:$0xff]  ;;  %v172_v52 = vadd.f32 %v40_v49, %v39_v48  ;;  %v101_v54 = vld [vmem:[#allocation2 + $0x240] sm:$0xff]  ;;  %v71_v56 = vld [vmem:[#allocation2 + $0x150] sm:$0xff] }
  0x20   :  { %v307_v53 = vadd.f32 %v130_v51, %v129_v50  ;;  %v102_v55 = vld [vmem:[#allocation2 + $0x248] sm:$0xff]  ;;  %v72_v57 = vld [vmem:[#allocation2 + $0x158] sm:$0xff]  ;;  %v41_v60 = vld [vmem:[#allocation2 + $0x60] sm:$0xff] }
  0x21   :  { %v265_v58 = vadd.f32 %v102_v55, %v101_v54  ;;  %v220_v59 = vadd.f32 %v72_v57, %v71_v56  ;;  %v42_v61 = vld [vmem:[#allocation2 + $0x68] sm:$0xff]  ;;  %v131_v62 = vld [vmem:[#allocation2 + $0x330] sm:$0xff]  ;;  %v132_v63 = vld [vmem:[#allocation2 + $0x338] sm:$0xff] }
  0x22   :  { %257 = vadd.xlane.f32.xlu1 %v256_v22  ;;  %v175_v0 = vadd.f32 %v42_v61, %v41_v60  ;;  %v310_v1 = vadd.f32 %v132_v63, %v131_v62  ;;  %v103_v2 = vld [vmem:[#allocation2 + $0x250] sm:$0xff]  ;;  %v104_v3 = vld [vmem:[#allocation2 + $0x258] sm:$0xff]  ;;  %v73_v4 = vld [vmem:[#allocation2 + $0x160] sm:$0xff] }
  0x23   :  { %254 = vadd.xlane.f32.xlu0 %v253_v23  ;;  %v74_v5 = vld [vmem:[#allocation2 + $0x168] sm:$0xff]  ;;  %v268_v6 = vadd.f32 %v104_v3, %v103_v2  ;;  %v43_v8 = vld [vmem:[#allocation2 + $0x70] sm:$0xff]  ;;  %v44_v9 = vld [vmem:[#allocation2 + $0x78] sm:$0xff] }
  0x24   :  { %v223_v7 = vadd.f32 %v74_v5, %v73_v4  ;;  %v133_v10 = vld [vmem:[#allocation2 + $0x340] sm:$0xff]  ;;  %v134_v11 = vld [vmem:[#allocation2 + $0x348] sm:$0xff]  ;;  %v178_v12 = vadd.f32 %v44_v9, %v43_v8  ;;  %v75_v16 = vld [vmem:[#allocation2 + $0x170] sm:$0xff] }
  0x25   :  { %v313_v13 = vadd.f32 %v134_v11, %v133_v10  ;;  %v105_v14 = vld [vmem:[#allocation2 + $0x260] sm:$0xff]  ;;  %v106_v15 = vld [vmem:[#allocation2 + $0x268] sm:$0xff]  ;;  %v76_v17 = vld [vmem:[#allocation2 + $0x178] sm:$0xff] }
  0x26   :  { %215 = vadd.xlane.f32.xlu1 %v214_v28  ;;  %v271_v18 = vadd.f32 %v106_v15, %v105_v14  ;;  %v226_v19 = vadd.f32 %v76_v17, %v75_v16  ;;  %v45_v20 = vld [vmem:[#allocation2 + $0x80] sm:$0xff]  ;;  %v46_v21 = vld [vmem:[#allocation2 + $0x88] sm:$0xff]  ;;  %v135_v22 = vld [vmem:[#allocation2 + $0x350] sm:$0xff] }
  0x27   :  { %167 = vadd.xlane.f32.xlu0 %v166_v29  ;;  %v136_v23 = vld [vmem:[#allocation2 + $0x358] sm:$0xff]  ;;  %v181_v24 = vadd.f32 %v46_v21, %v45_v20  ;;  %v107_v26 = vld [vmem:[#allocation2 + $0x270] sm:$0xff]  ;;  %v77_v28 = vld [vmem:[#allocation2 + $0x180] sm:$0xff] }
  0x28   :  { %v316_v25 = vadd.f32 %v136_v23, %v135_v22  ;;  %v108_v27 = vld [vmem:[#allocation2 + $0x278] sm:$0xff]  ;;  %v78_v29 = vld [vmem:[#allocation2 + $0x188] sm:$0xff]  ;;  %v47_v32 = vld [vmem:[#allocation2 + $0x90] sm:$0xff] }
  0x29   :  { %v274_v30 = vadd.f32 %v108_v27, %v107_v26  ;;  %v229_v31 = vadd.f32 %v78_v29, %v77_v28  ;;  %v48_v33 = vld [vmem:[#allocation2 + $0x98] sm:$0xff]  ;;  %v109_v38 = vld [vmem:[#allocation2 + $0x280] sm:$0xff]  ;;  %v110_v39 = vld [vmem:[#allocation2 + $0x288] sm:$0xff] }
  0x2a   :  { %302 = vadd.xlane.f32.xlu1 %v301_v34  ;;  %v137_v34 = vld [vmem:[#allocation2 + $0x360] sm:$0xff]  ;;  %v184_v36 = vadd.f32 %v48_v33, %v47_v32  ;;  %v277_v42 = vadd.f32 %v110_v39, %v109_v38  ;;  %v50_v45 = vld [vmem:[#allocation2 + $0xa8] sm:$0xff]  ;;  %v111_v50 = vld [vmem:[#allocation2 + $0x290] sm:$0xff] }
  0x2b   :  { %260 = vadd.xlane.f32.xlu0 %v259_v35  ;;  %v138_v35 = vld [vmem:[#allocation2 + $0x368] sm:$0xff]  ;;  %v49_v44 = vld [vmem:[#allocation2 + $0xa0] sm:$0xff]  ;;  %v112_v51 = vld [vmem:[#allocation2 + $0x298] sm:$0xff] }
  0x2c   :  { %v319_v37 = vadd.f32 %v138_v35, %v137_v34  ;;  %v187_v48 = vadd.f32 %v50_v45, %v49_v44  ;;  %v280_v54 = vadd.f32 %v112_v51, %v111_v50  ;;  %v51_v56 = vld [vmem:[#allocation2 + $0xb0] sm:$0xff]  ;;  %v52_v57 = vld [vmem:[#allocation2 + $0xb8] sm:$0xff]  ;;  %v113_v62 = vld [vmem:[#allocation2 + $0x2a0] sm:$0xff] }
  0x2d   :  { %v190_v60 = vadd.f32 %v52_v57, %v51_v56  ;;  %v114_v63 = vld [vmem:[#allocation2 + $0x2a8] sm:$0xff]  ;;  %v53_v4 = vld [vmem:[#allocation2 + $0xc0] sm:$0xff]  ;;  %v115_v10 = vld [vmem:[#allocation2 + $0x2b0] sm:$0xff] }
  0x2e   :  { %170 = vadd.xlane.f32.xlu1 %v169_v40  ;;  %v79_v40 = vld [vmem:[#allocation2 + $0x190] sm:$0xff]  ;;  %v283_v2 = vadd.f32 %v114_v63, %v113_v62  ;;  %v54_v5 = vld [vmem:[#allocation2 + $0xc8] sm:$0xff]  ;;  %v116_v11 = vld [vmem:[#allocation2 + $0x2b8] sm:$0xff] }
  0x2f   :  { %305 = vadd.xlane.f32.xlu0 %v304_v41  ;;  %v80_v41 = vld [vmem:[#allocation2 + $0x198] sm:$0xff]  ;;  %v193_v8 = vadd.f32 %v54_v5, %v53_v4  ;;  %v286_v14 = vadd.f32 %v116_v11, %v115_v10  ;;  %v55_v16 = vld [vmem:[#allocation2 + $0xd0] sm:$0xff]  ;;  %v117_v22 = vld [vmem:[#allocation2 + $0x2c0] sm:$0xff] }
  0x30   :  { %v232_v43 = vadd.f32 %v80_v41, %v79_v40  ;;  %v56_v17 = vld [vmem:[#allocation2 + $0xd8] sm:$0xff]  ;;  %v118_v23 = vld [vmem:[#allocation2 + $0x2c8] sm:$0xff]  ;;  %v57_v28 = vld [vmem:[#allocation2 + $0xe0] sm:$0xff] }
  0x31   :  { %v196_v20 = vadd.f32 %v56_v17, %v55_v16  ;;  %v289_v26 = vadd.f32 %v118_v23, %v117_v22  ;;  %v58_v29 = vld [vmem:[#allocation2 + $0xe8] sm:$0xff]  ;;  %v119_v34 = vld [vmem:[#allocation2 + $0x2d0] sm:$0xff]  ;;  %v120_v35 = vld [vmem:[#allocation2 + $0x2d8] sm:$0xff] }
  0x32   :  { %263 = vadd.xlane.f32.xlu1 %v262_v46  ;;  %v139_v46 = vld [vmem:[#allocation2 + $0x370] sm:$0xff]  ;;  %v199_v32 = vadd.f32 %v58_v29, %v57_v28  ;;  %v292_v38 = vadd.f32 %v120_v35, %v119_v34  ;;  %v60_v41 = vld [vmem:[#allocation2 + $0xf8] sm:$0xff]  ;;  %v413_v51 = vld [vmem:[%s2282_s1] sm:$0xff] }
  0x33   :  { %218 = vadd.xlane.f32.xlu0 %v217_v47  ;;  %v140_v47 = vld [vmem:[#allocation2 + $0x378] sm:$0xff]  ;;  %v59_v40 = vld [vmem:[#allocation2 + $0xf0] sm:$0xff]  ;;  %v154_v4 = vld [vmem:[#allocation2 + $0x3e8] sm:$0xff] }
  0x34   :  { %v322_v49 = vadd.f32 %v140_v47, %v139_v46  ;;  %v202_v44 = vadd.f32 %v60_v41, %v59_v40  ;;  %v121_v46 = vld [vmem:[#allocation2 + $0x2e0] sm:$0xff]  ;;  %v122_v47 = vld [vmem:[#allocation2 + $0x2e8] sm:$0xff]  ;;  %v151_v57 = vld [vmem:[#allocation2 + $0x3d0] sm:$0xff] }
  0x35   :  { %v295_v50 = vadd.f32 %v122_v47, %v121_v46  ;;  %v416_v62 = vld [vmem:[%s2282_s1 + $0x18] sm:$0xff]  ;;  %v419_v10 = vld [vmem:[%s2282_s1 + $0x30] sm:$0xff] }
  0x36   :  { %173 = vadd.xlane.f32.xlu1 %v172_v52  ;;  %v81_v52 = vld [vmem:[#allocation2 + $0x1a0] sm:$0xff]  ;;  %v420_v11 = vld [vmem:[%s2282_s1 + $0x38] sm:$0xff]  ;;  %v423_v16 = vld [vmem:[%s2282_s1 + $0x50] sm:$0xff] }
  0x37   :  { %308 = vadd.xlane.f32.xlu0 %v307_v53  ;;  %v82_v53 = vld [vmem:[#allocation2 + $0x1a8] sm:$0xff]  ;;  %v424_v17 = vld [vmem:[%s2282_s1 + $0x58] sm:$0xff]  ;;  %v427_v22 = vld [vmem:[%s2282_s1 + $0x70] sm:$0xff] }
  0x38   :  { %v235_v55 = vadd.f32 %v82_v53, %v81_v52  ;;  %v414_v52 = vld [vmem:[%s2282_s1 + $0x8] sm:$0xff]  ;;  %v428_v23 = vld [vmem:[%s2282_s1 + $0x78] sm:$0xff] }
  0x39   :  { %v1603_v56 = vpack.c.bf16 %v414_v52, %v413_v51 }
  0x3a   :  { %266 = vadd.xlane.f32.xlu1 %v265_v58  ;;  %v141_v58 = vld [vmem:[#allocation2 + $0x380] sm:$0xff] }
  0x3b   :  { %221 = vadd.xlane.f32.xlu0 %v220_v59  ;;  %v142_v59 = vld [vmem:[#allocation2 + $0x388] sm:$0xff] }
  0x3c   :  { %v325_v61 = vadd.f32 %v142_v59, %v141_v58  ;;  %v152_v58 = vld [vmem:[#allocation2 + $0x3d8] sm:$0xff]  ;;  %v1816_v59 = vmov 0.0|0.0  }
  0x3d   :  { %1602 = vmatprep.subr.bf16.mxu0 %v1816_v59  ;;  %v340_v63 = vadd.f32 %v152_v58, %v151_v57 }
  0x3e   :  { %176 = vadd.xlane.f32.xlu1 %v175_v0  ;;  %v83_v0 = vld [vmem:[#allocation2 + $0x1b0] sm:$0xff]  ;;  %1604 = vmatpush3.bf16.msra.mxu0 %v1603_v56 }
  0x3f   :  { %311 = vadd.xlane.f32.xlu0 %v310_v1  ;;  %v84_v1 = vld [vmem:[#allocation2 + $0x1b8] sm:$0xff]  ;;  %1605 = vmatprep.subr.bf16.mxu0 %v1816_v59 }
  0x40   :  { %v238_v3 = vadd.f32 %v84_v1, %v83_v0  ;;  %v155_v0 = vld [vmem:[#allocation2 + $0x3f0] sm:$0xff]  ;;  %v156_v1 = vld [vmem:[#allocation2 + $0x3f8] sm:$0xff] }
  0x41   :  { %v346_v5 = vadd.f32 %v156_v1, %v155_v0 }
  0x42   :  { %269 = vadd.xlane.f32.xlu1 %v268_v6  ;;  %v143_v6 = vld [vmem:[#allocation2 + $0x390] sm:$0xff] }
  0x43   :  { %224 = vadd.xlane.f32.xlu0 %v223_v7  ;;  %v144_v7 = vld [vmem:[#allocation2 + $0x398] sm:$0xff] }
  0x44   :  { %v328_v9 = vadd.f32 %v144_v7, %v143_v6  ;;  %v417_v6 = vld [vmem:[%s2282_s1 + $0x20] sm:$0xff]  ;;  %v418_v7 = vld [vmem:[%s2282_s1 + $0x28] sm:$0xff] }
  0x46   :  { %179 = vadd.xlane.f32.xlu1 %v178_v12  ;;  %v85_v12 = vld [vmem:[#allocation2 + $0x1c0] sm:$0xff] }
  0x47   :  { %314 = vadd.xlane.f32.xlu0 %v313_v13  ;;  %v86_v13 = vld [vmem:[#allocation2 + $0x1c8] sm:$0xff] }
  0x48   :  { %v241_v15 = vadd.f32 %v86_v13, %v85_v12  ;;  %v1612_v12 = vpack.c.bf16 %v420_v11, %v419_v10  ;;  %v421_v13 = vld [vmem:[%s2282_s1 + $0x40] sm:$0xff] }
  0x4a   :  { %272 = vadd.xlane.f32.xlu1 %v271_v18  ;;  %v145_v18 = vld [vmem:[#allocation2 + $0x3a0] sm:$0xff] }
  0x4b   :  { %227 = vadd.xlane.f32.xlu0 %v226_v19  ;;  %v146_v19 = vld [vmem:[#allocation2 + $0x3a8] sm:$0xff] }
  0x4c   :  { %v331_v21 = vadd.f32 %v146_v19, %v145_v18  ;;  %v1618_v18 = vpack.c.bf16 %v424_v17, %v423_v16  ;;  %v425_v19 = vld [vmem:[%s2282_s1 + $0x60] sm:$0xff] }
  0x4e   :  { %182 = vadd.xlane.f32.xlu1 %v181_v24  ;;  %v87_v24 = vld [vmem:[#allocation2 + $0x1d0] sm:$0xff] }
  0x4f   :  { %317 = vadd.xlane.f32.xlu0 %v316_v25  ;;  %v88_v25 = vld [vmem:[#allocation2 + $0x1d8] sm:$0xff] }
  0x50   :  { %v244_v27 = vadd.f32 %v88_v25, %v87_v24  ;;  %v1624_v25 = vpack.c.bf16 %v428_v23, %v427_v22 }
  0x52   :  { %275 = vadd.xlane.f32.xlu1 %v274_v30  ;;  %v147_v30 = vld [vmem:[#allocation2 + $0x3b0] sm:$0xff] }
  0x53   :  { %230 = vadd.xlane.f32.xlu0 %v229_v31  ;;  %v148_v31 = vld [vmem:[#allocation2 + $0x3b8] sm:$0xff] }
  0x54   :  { %v334_v33 = vadd.f32 %v148_v31, %v147_v30 }
  0x56   :  { %185 = vadd.xlane.f32.xlu1 %v184_v36  ;;  %v89_v36 = vld [vmem:[#allocation2 + $0x1e0] sm:$0xff] }
  0x57   :  { %320 = vadd.xlane.f32.xlu0 %v319_v37  ;;  %v90_v37 = vld [vmem:[#allocation2 + $0x1e8] sm:$0xff] }
  0x58   :  { %v247_v39 = vadd.f32 %v90_v37, %v89_v36 }
  0x5a   :  { %278 = vadd.xlane.f32.xlu1 %v277_v42  ;;  %v149_v42 = vld [vmem:[#allocation2 + $0x3c0] sm:$0xff] }
  0x5b   :  { %233 = vadd.xlane.f32.xlu0 %v232_v43  ;;  %v150_v43 = vld [vmem:[#allocation2 + $0x3c8] sm:$0xff] }
  0x5c   :  { %v337_v45 = vadd.f32 %v150_v43, %v149_v42 }
  0x5e   :  { %188 = vadd.xlane.f32.xlu1 %v187_v48  ;;  %v91_v48 = vld [vmem:[#allocation2 + $0x1f0] sm:$0xff] }
  0x5f   :  { %323 = vadd.xlane.f32.xlu0 %v322_v49  ;;  %v92_v49 = vld [vmem:[#allocation2 + $0x1f8] sm:$0xff] }
  0x60   :  { %v250_v53 = vadd.f32 %v92_v49, %v91_v48 }
  0x62   :  { %281 = vadd.xlane.f32.xlu1 %v280_v54  ;;  %v123_v54 = vld [vmem:[#allocation2 + $0x2f0] sm:$0xff] }
  0x63   :  { %236 = vadd.xlane.f32.xlu0 %v235_v55  ;;  %v124_v55 = vld [vmem:[#allocation2 + $0x2f8] sm:$0xff] }
  0x66   :  { %191 = vadd.xlane.f32.xlu1 %v190_v60  ;;  %v298_v60 = vadd.f32 %v124_v55, %v123_v54 }
  0x67   :  { %326 = vadd.xlane.f32.xlu0 %v325_v61  ;;  %v415_v61 = vld [vmem:[%s2282_s1 + $0x10] sm:$0xff] }
  0x6a   :  { %284 = vadd.xlane.f32.xlu1 %v283_v2  ;;  %v1606_v2 = vpack.c.bf16 %v416_v62, %v415_v61 }
  0x6b   :  { %239 = vadd.xlane.f32.xlu0 %v238_v3  ;;  %v153_v3 = vld [vmem:[#allocation2 + $0x3e0] sm:$0xff] }
  0x6c   :  { %1607 = vmatpush3.bf16.msra.mxu0 %v1606_v2 }
  0x6d   :  { %1608 = vmatprep.subr.bf16.mxu0 %v1816_v59 }
  0x6e   :  { %194 = vadd.xlane.f32.xlu1 %v193_v8  ;;  %v343_v8 = vadd.f32 %v154_v4, %v153_v3 }
  0x6f   :  { %329 = vadd.xlane.f32.xlu0 %v328_v9  ;;  %v1609_v9 = vpack.c.bf16 %v418_v7, %v417_v6 }
  0x71   :  { %1610 = vmatpush3.bf16.msra.mxu0 %v1609_v9 }
  0x72   :  { %287 = vadd.xlane.f32.xlu1 %v286_v14  ;;  %1611 = vmatprep.subr.bf16.mxu0 %v1816_v59  ;;  %v422_v14 = vld [vmem:[%s2282_s1 + $0x48] sm:$0xff] }
  0x73   :  { %242 = vadd.xlane.f32.xlu0 %v241_v15  ;;  %v1615_v15 = vpack.c.bf16 %v422_v14, %v421_v13 }
  0x75   :  { %1613 = vmatpush3.bf16.msra.mxu0 %v1612_v12 }
  0x76   :  { %197 = vadd.xlane.f32.xlu1 %v196_v20  ;;  %1614 = vmatprep.subr.bf16.mxu0 %v1816_v59  ;;  %v426_v20 = vld [vmem:[%s2282_s1 + $0x68] sm:$0xff] }
  0x77   :  { %332 = vadd.xlane.f32.xlu0 %v331_v21  ;;  %v1621_v21 = vpack.c.bf16 %v426_v20, %v425_v19 }
  0x79   :  { %1616 = vmatpush3.bf16.msra.mxu0 %v1615_v15 }
  0x7a   :  { %290 = vadd.xlane.f32.xlu1 %v289_v26  ;;  %1617 = vmatprep.subr.bf16.mxu0 %v1816_v59 }
  0x7b   :  { %245 = vadd.xlane.f32.xlu0 %v244_v27  ;;  %v1818_v27 = vmov 0.0  }
  0x7c   :  { %1594 = vmatprep.mubr.msk.f32.mxu0 %vm1817_vm0, %v1818_v27  ;;  %1597 = vmatprep.subr.mxu1 %v1818_v27 }
  0x7d   :  { %1619 = vmatpush3.bf16.msra.mxu0 %v1618_v18  ;;  %1599 = vmatprep.mubr.msk.f32.mxu1 %vm1817_vm0, %v1818_v27  ;;  %vm841_vm0 = vcmask 1041409  }
  0x7e   :  { %200 = vadd.xlane.f32.xlu1 %v199_v32  ;;  %1620 = vmatprep.subr.bf16.mxu0 %v1816_v59 }
  0x7f   :  { %335 = vadd.xlane.f32.xlu0 %v334_v33 }
  0x81   :  { %1622 = vmatpush3.bf16.msra.mxu0 %v1621_v21 }
  0x82   :  { %293 = vadd.xlane.f32.xlu1 %v292_v38  ;;  %1623 = vmatprep.subr.bf16.mxu0 %v1816_v59 }
  0x83   :  { %248 = vadd.xlane.f32.xlu0 %v247_v39 }
  0x85   :  { %1625 = vmatpush3.bf16.msra.mxu0 %v1624_v25 }
  0x86   :  { %203 = vadd.xlane.f32.xlu1 %v202_v44 }
  0x87   :  { %338 = vadd.xlane.f32.xlu0 %v337_v45 }
  0x8a   :  { %296 = vadd.xlane.f32.xlu1 %v295_v50 }
  0x8b   :  { %251 = vadd.xlane.f32.xlu0 %v250_v53 }
  0x8e   :  { %299 = vadd.xlane.f32.xlu1 %v298_v60  ;;  %v493_v60 = vlaneseq }
  0x8f   :  { %341 = vadd.xlane.f32.xlu0 %v340_v63 }
  0x90   :  { %v494_v63 = vand.u32 127, %v493_v60  ;;  %v1977_v1 = vshrl.u32 %v493_v60, 7 }
  0x92   :  { %347 = vadd.xlane.f32.xlu1 %v346_v5  ;;  %v499_v3 = vadd.s32 4294967288, %v494_v63  ;;  %v506_v4 = vadd.s32 4294967280, %v494_v63  ;;  %v513_v5 = vadd.s32 4294967272, %v494_v63  ;;  %v520_v6 = vadd.s32 4294967264, %v494_v63 }
  0x93   :  { %344 = vadd.xlane.f32.xlu0 %v343_v8  ;;  %v527_v7 = vadd.s32 4294967256, %v494_v63  ;;  %v534_v8 = vadd.s32 4294967248, %v494_v63  ;;  %v541_v9 = vadd.s32 4294967240, %v494_v63  ;;  %v548_v10 = vadd.s32 4294967232, %v494_v63 }
  0x94   :  { %v1984_v12 = vsub.s32 %v494_v63, %v1977_v1  ;;  %v555_v13 = vadd.s32 4294967224, %v494_v63  ;;  %v562_v14 = vadd.s32 4294967216, %v494_v63  ;;  %v569_v16 = vadd.s32 4294967208, %v494_v63 }
  0x95   :  { %v1989_v17 = vsub.s32 %v499_v3, %v1977_v1  ;;  %v1992_v18 = vsub.s32 %v506_v4, %v1977_v1  ;;  %v576_v19 = vadd.s32 4294967200, %v494_v63  ;;  %v1995_v20 = vsub.s32 %v513_v5, %v1977_v1 }
  0x96   :  { %v1998_v21 = vsub.s32 %v520_v6, %v1977_v1  ;;  %v2001_v22 = vsub.s32 %v527_v7, %v1977_v1  ;;  %v2004_v23 = vsub.s32 %v534_v8, %v1977_v1  ;;  %v2007_v25 = vsub.s32 %v541_v9, %v1977_v1 }
  0x97   :  { %v2010_v27 = vsub.s32 %v548_v10, %v1977_v1  ;;  %v583_v3 = vadd.s32 4294967192, %v494_v63  ;;  %v590_v4 = vadd.s32 4294967184, %v494_v63  ;;  %v2016_v6 = vsub.s32 %v555_v13, %v1977_v1 }
  0x98   :  { %v2019_v7 = vsub.s32 %v562_v14, %v1977_v1  ;;  %v2022_v8 = vsub.s32 %v569_v16, %v1977_v1 }
  0x9a   :  { %2292 = vst [vmem:[#allocation10_spill] sm:$0xff] %v2019_v7  ;;  %2293 = vst [vmem:[#allocation11_spill] sm:$0xff] %v2022_v8 }
  0xa3   :  { %v1903_v24 = vpop.xlane.xlu1 %206 }
  0xa4   :  { %v1905_v26 = vpop.xlane.xlu0 %158  ;;  %v365_v10 = vmul.f32 0.00390625, %v1903_v24 }
  0xa5   :  { %v349_v8 = vmul.f32 0.00390625, %v1905_v26 }
  0xa6   :  { %v607_v26 = vrot.slane %v365_v10, %v1984_v12 }
  0xa7   :  { %v1907_v28 = vpop.xlane.xlu1 %209 }
  0xa8   :  { %v1909_v29 = vpop.xlane.xlu0 %161  ;;  %v366_v5 = vmul.f32 0.00390625, %v1907_v28  ;;  %v2030_v28 = vsub.s32 %v576_v19, %v1977_v1 }
  0xaa   :  { %2295 = vst [vmem:[#allocation13_spill] sm:$0xff] %v2030_v28 }
  0xab   :  { %v1911_v30 = vpop.xlane.xlu1 %212 }
  0xac   :  { %v1913_v31 = vpop.xlane.xlu0 %164 }
  0xad   :  { %v351_v13 = vmul.f32 0.00390625, %v1913_v31  ;;  %v611_v31 = vrot.slane %v366_v5, %v1989_v17 }
  0xaf   :  { %v1915_v32 = vpop.xlane.xlu1 %257 }
  0xb0   :  { %v1917_v33 = vpop.xlane.xlu0 %254  ;;  %v382_v14 = vmul.f32 0.00390625, %v1915_v32 }
  0xb1   :  { %v381_v7 = vmul.f32 0.00390625, %v1917_v33 }
  0xb3   :  { %v1919_v34 = vpop.xlane.xlu1 %215  ;;  %v686_v5 = vrot.slane %v381_v7, %v1984_v12 }
  0xb4   :  { %v1921_v35 = vpop.xlane.xlu0 %167  ;;  %v368_v16 = vmul.f32 0.00390625, %v1919_v34  ;;  %v597_v34 = vadd.s32 4294967176, %v494_v63 }
  0xb5   :  { %v352_v24 = vmul.f32 0.00390625, %v1921_v35 }
  0xb7   :  { %v1923_v36 = vpop.xlane.xlu1 %302  ;;  %v517_v63 = vrot.slane %v352_v24, %v1995_v20 }
  0xb8   :  { %v1925_v37 = vpop.xlane.xlu0 %260  ;;  %v397_v10 = vmul.f32 0.00390625, %v1923_v36 }
  0xb9   :  { %v383_v32 = vmul.f32 0.00390625, %v1925_v37  ;;  %v621_v37 = vrot.slane %v368_v16, %v1995_v20 }
  0xbb   :  { %v1927_v38 = vpop.xlane.xlu1 %170 }
  0xbc   :  { %v1929_v39 = vpop.xlane.xlu0 %305  ;;  %v353_v33 = vmul.f32 0.00390625, %v1927_v38  ;;  %v498_v38 = vrot.slane %v349_v8, %v1984_v12 }
  0xbf   :  { %v1931_v40 = vpop.xlane.xlu1 %263 }
  0xc0   :  { %v1933_v41 = vpop.xlane.xlu0 %218 }
  0xc1   :  { %v369_v7 = vmul.f32 0.00390625, %v1933_v41 }
  0xc3   :  { %v1935_v42 = vpop.xlane.xlu1 %173 }
  0xc4   :  { %v1937_v43 = vpop.xlane.xlu0 %308 }
  0xc7   :  { %v1939_v44 = vpop.xlane.xlu1 %266 }
  0xc8   :  { %v1941_v45 = vpop.xlane.xlu0 %221 }
  0xcb   :  { %v1943_v46 = vpop.xlane.xlu1 %176 }
  0xcc   :  { %v1945_v47 = vpop.xlane.xlu0 %311 }
  0xcf   :  { %v1947_v48 = vpop.xlane.xlu1 %269 }
  0xd0   :  { %v1949_v49 = vpop.xlane.xlu0 %224 }
  0xd3   :  { %v1951_v50 = vpop.xlane.xlu1 %179 }
  0xd4   :  { %v1953_v51 = vpop.xlane.xlu0 %314 }
  0xd7   :  { %v1955_v52 = vpop.xlane.xlu1 %272 }
  0xd8   :  { %v1957_v53 = vpop.xlane.xlu0 %227 }
  0xdb   :  { %v1959_v54 = vpop.xlane.xlu1 %182 }
  0xdc   :  { %v1961_v55 = vpop.xlane.xlu0 %317 }
  0xdf   :  { %v1963_v56 = vpop.xlane.xlu1 %275 }
  0xe0   :  { %v1965_v57 = vpop.xlane.xlu0 %230 }
  0xe3   :  { %v1967_v58 = vpop.xlane.xlu1 %185 }
  0xe4   :  { %v1969_v59 = vpop.xlane.xlu0 %320 }
  0xe7   :  { %v1971_v61 = vpop.xlane.xlu1 %278 }
  0xe8   :  { %v1973_v62 = vpop.xlane.xlu0 %233 }
  0xeb   :  { %v1975_v0 = vpop.xlane.xlu1 %188 }
  0xec   :  { %v1979_v2 = vpop.xlane.xlu0 %323 }
  0xef   :  { %v1981_v11 = vpop.xlane.xlu1 %281 }
  0xf0   :  { %v1986_v15 = vpop.xlane.xlu0 %236 }
  0xf1   :  { %2290 = vst [vmem:[#allocation8_spill] sm:$0xff] %v1986_v15  ;;  %v350_v15 = vmul.f32 0.00390625, %v1909_v29  ;;  %v2041_v29 = vsub.s32 %v583_v3, %v1977_v1  ;;  %v398_v3 = vmul.f32 0.00390625, %v1929_v39  ;;  %v612_v39 = vsel %vm504_vm1, %v611_v31, %v607_v26 }
  0xf2   :  { %v765_v26 = vrot.slane %v397_v10, %v1984_v12  ;;  %v370_v12 = vmul.f32 0.00390625, %v1941_v45  ;;  %v356_v10 = vmul.f32 0.00390625, %v1951_v50  ;;  %v387_v45 = vmul.f32 0.00390625, %v1955_v52 }
  0xf3   :  { %v2012_v60 = vpop.xlane.xlu1 %191  ;;  %2296 = vst [vmem:[#allocation14_spill] sm:$0xff] %v2041_v29  ;;  %v503_v35 = vrot.slane %v350_v15, %v1989_v17  ;;  %v384_v15 = vmul.f32 0.00390625, %v1931_v40  ;;  %v769_v36 = vrot.slane %v398_v3, %v1989_v17  ;;  %v2075_v40 = vsub.s32 %v597_v34, %v1977_v1 }
  0xf4   :  { %2291 = vst [vmem:[#allocation9_spill] sm:$0xff] %v2012_v60  ;;  %v2024_v9 = vpop.xlane.xlu0 %326  ;;  %v367_v60 = vmul.f32 0.00390625, %v1911_v30  ;;  %v2044_v30 = vsub.s32 %v590_v4, %v1977_v1  ;;  %v510_v4 = vrot.slane %v351_v13, %v1992_v18  ;;  %v695_v13 = vrot.slane %v383_v32, %v1992_v18 }
  0xf5   :  { %2294 = vst [vmem:[#allocation12_spill] sm:$0xff] %v2024_v9  ;;  %v505_v8 = vsel %vm504_vm1, %v503_v35, %v498_v38  ;;  %v626_v3 = vrot.slane %v369_v7, %v1998_v21  ;;  %v386_v38 = vmul.f32 0.00390625, %v1947_v48  ;;  %v372_v48 = vmul.f32 0.00390625, %v1957_v53 }
  0xf6   :  { %2297 = vst [vmem:[#allocation15_spill] sm:$0xff] %v2044_v30  ;;  %v616_v28 = vrot.slane %v367_v60, %v1992_v18  ;;  %v690_v30 = vrot.slane %v382_v14, %v1989_v17  ;;  %v524_v14 = vrot.slane %v353_v33, %v1998_v21  ;;  %v512_v29 = vsel %vm511_vm2, %v510_v4, %v505_v8 }
  0xf7   :  { %v2038_v9 = vpop.xlane.xlu1 %284  ;;  %v354_v33 = vmul.f32 0.00390625, %v1935_v42  ;;  %v519_v41 = vsel %vm518_vm3, %v517_v63, %v512_v29  ;;  %v399_v17 = vmul.f32 0.00390625, %v1937_v43  ;;  %v385_v42 = vmul.f32 0.00390625, %v1939_v44 }
  0xf8   :  { %v2049_v19 = vpop.xlane.xlu0 %239  ;;  %v617_v24 = vsel %vm511_vm2, %v616_v28, %v612_v39  ;;  %v691_v31 = vsel %vm504_vm1, %v690_v30, %v686_v5  ;;  %v700_v28 = vrot.slane %v384_v15, %v1995_v20  ;;  %v526_v30 = vsel %vm525_vm4, %v524_v14, %v519_v41 }
  0xf9   :  { %v622_v32 = vsel %vm518_vm3, %v621_v37, %v617_v24  ;;  %v696_v35 = vsel %vm511_vm2, %v695_v13, %v691_v31  ;;  %v770_v29 = vsel %vm504_vm1, %v769_v36, %v765_v26  ;;  %v355_v5 = vmul.f32 0.00390625, %v1943_v46 }
  0xfa   :  { %v400_v43 = vmul.f32 0.00390625, %v1945_v47  ;;  %v531_v37 = vrot.slane %v354_v33, %v2001_v22  ;;  %v371_v63 = vmul.f32 0.00390625, %v1949_v49  ;;  %v701_v44 = vsel %vm518_vm3, %v700_v28, %v696_v35 }
  0xfb   :  { %v2063_v60 = vpop.xlane.xlu1 %194  ;;  %v774_v15 = vrot.slane %v399_v17, %v1992_v18  ;;  %v401_v39 = vmul.f32 0.00390625, %v1953_v51  ;;  %v627_v47 = vsel %vm525_vm4, %v626_v3, %v622_v32  ;;  %v705_v13 = vrot.slane %v385_v42, %v1998_v21 }
  0xfc   :  { %v2069_v16 = vpop.xlane.xlu0 %329  ;;  %v357_v49 = vmul.f32 0.00390625, %v1959_v54  ;;  %v631_v50 = vrot.slane %v370_v12, %v2001_v22  ;;  %v538_v18 = vrot.slane %v355_v5, %v2004_v23  ;;  %v779_v51 = vrot.slane %v400_v43, %v1995_v20 }
  0xfd   :  { %v402_v52 = vmul.f32 0.00390625, %v1961_v55  ;;  %v533_v7 = vsel %vm532_vm5, %v531_v37, %v526_v30  ;;  %v710_v8 = vrot.slane %v386_v38, %v2001_v22  ;;  %v636_v24 = vrot.slane %v371_v63, %v2004_v23 }
  0xfe   :  { %v545_v53 = vrot.slane %v356_v10, %v2007_v25  ;;  %v775_v54 = vsel %vm511_vm2, %v774_v15, %v770_v29  ;;  %v784_v36 = vrot.slane %v401_v39, %v1998_v21  ;;  %v715_v31 = vrot.slane %v387_v45, %v2004_v23 }
  0xff   :  { %v2085_v34 = vpop.xlane.xlu1 %287  ;;  %v388_v32 = vmul.f32 0.00390625, %v1963_v56  ;;  %v706_v55 = vsel %vm525_vm4, %v705_v13, %v701_v44  ;;  %v641_v33 = vrot.slane %v372_v48, %v2007_v25  ;;  %v552_v41 = vrot.slane %v357_v49, %v2010_v27  ;;  %v2298_v13 = vld [vmem:[#allocation8_spill] sm:$0xff]  ;;  %v2299_v49 = vld [vmem:[#allocation9_spill] sm:$0xff] }
 0x100   :  { %v2091_v4 = vpop.xlane.xlu0 %242  ;;  %v373_v26 = vmul.f32 0.00390625, %v1965_v57  ;;  %v632_v17 = vsel %vm532_vm5, %v631_v50, %v627_v47  ;;  %v540_v21 = vsel %vm539_vm6, %v538_v18, %v533_v7  ;;  %v780_v35 = vsel %vm518_vm3, %v779_v51, %v775_v54  ;;  %v2300_v51 = vld [vmem:[#allocation12_spill] sm:$0xff]  ;;  %v2301_v54 = vld [vmem:[#allocation10_spill] sm:$0xff] }
 0x101   :  { %v789_v56 = vrot.slane %v402_v52, %v2001_v22  ;;  %v711_v30 = vsel %vm532_vm5, %v710_v8, %v706_v55  ;;  %v637_v3 = vsel %vm539_vm6, %v636_v24, %v632_v17  ;;  %v547_v42 = vsel %vm546_vm7, %v545_v53, %v540_v21 }
 0x102   :  { %v358_v29 = vmul.f32 0.00390625, %v1967_v58  ;;  %v785_v57 = vsel %vm525_vm4, %v784_v36, %v780_v35  ;;  %v716_v12 = vsel %vm539_vm6, %v715_v31, %v711_v30  ;;  %v720_v5 = vrot.slane %v388_v32, %v2007_v25  ;;  %v2303_v35 = vld [vmem:[#allocation13_spill] sm:$0xff] }
 0x103   :  { %v2105_v46 = vpop.xlane.xlu1 %197  ;;  %v403_v43 = vmul.f32 0.00390625, %v1969_v59  ;;  %v642_v22 = vsel %vm546_vm7, %v641_v33, %v637_v3  ;;  %v554_v38 = vsel %vm553_vm8, %v552_v41, %v547_v42  ;;  %v646_v63 = vrot.slane %v373_v26, %v2010_v27  ;;  %v2302_v33 = vld [vmem:[#allocation11_spill] sm:$0xff] }
 0x104   :  { %v2111_v14 = vpop.xlane.xlu0 %332  ;;  %v389_v58 = vmul.f32 0.00390625, %v1971_v61  ;;  %v790_v44 = vsel %vm532_vm5, %v789_v56, %v785_v57  ;;  %v374_v15 = vmul.f32 0.00390625, %v1973_v62  ;;  %v359_v39 = vmul.f32 0.00390625, %v1975_v0 }
 0x105   :  { %v404_v59 = vmul.f32 0.00390625, %v1979_v2  ;;  %v559_v45 = vrot.slane %v358_v29, %v2016_v6  ;;  %v390_v47 = vmul.f32 0.00390625, %v1981_v11  ;;  %v375_v48 = vmul.f32 0.00390625, %v2298_v13 }
 0x106   :  { %v360_v50 = vmul.f32 0.00390625, %v2299_v49  ;;  %v721_v61 = vsel %vm546_vm7, %v720_v5, %v716_v12  ;;  %v794_v18 = vrot.slane %v403_v43, %v2004_v23  ;;  %v405_v52 = vmul.f32 0.00390625, %v2300_v51 }
 0x107   :  { %v2125_v20 = vpop.xlane.xlu1 %290  ;;  %v391_v62 = vmul.f32 0.00390625, %v2038_v9  ;;  %v647_v2 = vsel %vm553_vm8, %v646_v63, %v642_v22  ;;  %v725_v7 = vrot.slane %v389_v58, %v2010_v27  ;;  %v376_v8 = vmul.f32 0.00390625, %v2049_v19 }
 0x108   :  { %v2131_v28 = vpop.xlane.xlu0 %245  ;;  %v361_v11 = vmul.f32 0.00390625, %v2063_v60  ;;  %v651_v53 = vrot.slane %v374_v15, %v2016_v6  ;;  %v566_v36 = vrot.slane %v359_v39, %v2301_v54  ;;  %v799_v23 = vrot.slane %v404_v59, %v2007_v25 }
 0x109   :  { %v406_v31 = vmul.f32 0.00390625, %v2069_v16  ;;  %v561_v9 = vsel %vm560_vm9, %v559_v45, %v554_v38  ;;  %v730_v32 = vrot.slane %v390_v47, %v2016_v6  ;;  %v656_v55 = vrot.slane %v375_v48, %v2301_v54  ;;  %v2304_v48 = vld [vmem:[#allocation14_spill] sm:$0xff] }
 0x10a   :  { %v573_v41 = vrot.slane %v360_v50, %v2302_v33  ;;  %v795_v19 = vsel %vm539_vm6, %v794_v18, %v790_v44  ;;  %v804_v60 = vrot.slane %v405_v52, %v2010_v27  ;;  %v735_v26 = vrot.slane %v391_v62, %v2301_v54 }
 0x10b   :  { %v2145_v37 = vpop.xlane.xlu1 %200  ;;  %v392_v17 = vmul.f32 0.00390625, %v2085_v34  ;;  %v726_v16 = vsel %vm553_vm8, %v725_v7, %v721_v61  ;;  %v661_v21 = vrot.slane %v376_v8, %v2302_v33  ;;  %v580_v56 = vrot.slane %v361_v11, %v2303_v35 }
 0x10c   :  { %v2151_v10 = vpop.xlane.xlu0 %335  ;;  %v377_v30 = vmul.f32 0.00390625, %v2091_v4  ;;  %v652_v42 = vsel %vm560_vm9, %v651_v53, %v647_v2  ;;  %v568_v29 = vsel %vm567_vm10, %v566_v36, %v561_v9  ;;  %v800_v27 = vsel %vm546_vm7, %v799_v23, %v795_v19 }
 0x10d   :  { %v809_v57 = vrot.slane %v406_v31, %v2016_v6  ;;  %v731_v34 = vsel %vm560_vm9, %v730_v32, %v726_v16  ;;  %v657_v12 = vsel %vm567_vm10, %v656_v55, %v652_v42  ;;  %v575_v5 = vsel %vm574_vm11, %v573_v41, %v568_v29 }
 0x10e   :  { %v362_v43 = vmul.f32 0.00390625, %v2105_v46  ;;  %v805_v22 = vsel %vm553_vm8, %v804_v60, %v800_v27  ;;  %v736_v4 = vsel %vm567_vm10, %v735_v26, %v731_v34  ;;  %v740_v38 = vrot.slane %v392_v17, %v2302_v33 }
 0x10f   :  { %v294_v0 = vpop.xlane.xlu1 %293  ;;  %v393_v63 = vmul.f32 0.00390625, %v2125_v20  ;;  %v662_v44 = vsel %vm574_vm11, %v661_v21, %v657_v12  ;;  %v582_v6 = vsel %vm581_vm12, %v580_v56, %v575_v5  ;;  %v666_v15 = vrot.slane %v377_v30, %v2303_v35 }
 0x110   :  { %v249_v24 = vpop.xlane.xlu0 %248  ;;  %v378_v39 = vmul.f32 0.00390625, %v2131_v28  ;;  %v810_v46 = vsel %vm560_vm9, %v809_v57, %v805_v22  ;;  %v407_v45 = vmul.f32 0.00390625, %v2111_v14  ;;  %v394_v47 = vmul.f32 0.00390625, %v294_v0 }
 0x111   :  { %v379_v13 = vmul.f32 0.00390625, %v249_v24  ;;  %v587_v20 = vrot.slane %v362_v43, %v2304_v48  ;;  %v408_v49 = vmul.f32 0.00390625, %v2151_v10  ;;  %v741_v18 = vsel %vm574_vm11, %v740_v38, %v736_v4  ;;  %v2305_v24 = vld [vmem:[#allocation15_spill] sm:$0xff] }
 0x112   :  { %v745_v28 = vrot.slane %v393_v63, %v2303_v35  ;;  %v363_v51 = vmul.f32 0.00390625, %v2145_v37  ;;  %vm843_vm1 = vcmask 1042434   ;;  %v667_v14 = vsel %vm581_vm12, %v666_v15, %v662_v44 }
 0x113   :  { %v204_v25 = vpop.xlane.xlu1 %203  ;;  %v671_v0 = vrot.slane %v378_v39, %v2304_v48  ;;  %v814_v10 = vrot.slane %v407_v45, %v2301_v54  ;;  %v750_v11 = vrot.slane %v394_v47, %v2304_v48  ;;  %v676_v53 = vrot.slane %v379_v13, %v2305_v24 }
 0x114   :  { %v339_v3 = vpop.xlane.xlu0 %338  ;;  %v364_v2 = vmul.f32 0.00390625, %v204_v25  ;;  %v589_v23 = vsel %vm588_vm13, %v587_v20, %v582_v6  ;;  %v819_v37 = vrot.slane %v408_v49, %v2302_v33  ;;  %v746_v32 = vsel %vm581_vm12, %v745_v28, %v741_v18 }
 0x115   :  { %v409_v52 = vmul.f32 0.00390625, %v339_v3  ;;  %v594_v55 = vrot.slane %v363_v51, %v2305_v24  ;;  %v672_v60 = vsel %vm588_vm13, %v671_v0, %v667_v14  ;;  %v815_v16 = vsel %vm567_vm10, %v814_v10, %v810_v46  ;;  %v1638_v0 = vld [vmem:[#allocation2 + $0x18] sm:$0xff]  ;;  %v1640_v10 = vld [vmem:[#allocation2 + $0x8] sm:$0xff] }
 0x116   :  { %v601_v26 = vrot.slane %v364_v2, %v2075_v40  ;;  %v751_v21 = vsel %vm588_vm13, %v750_v11, %v746_v32  ;;  %v677_v56 = vsel %vm595_vm14, %v676_v53, %v672_v60  ;;  %vm845_vm2 = vcmask 1043459   ;;  %v1645_v60 = vld [vmem:[#allocation2 + $0x30] sm:$0xff] }
 0x117   :  { %v297_v58 = vpop.xlane.xlu1 %296  ;;  %v824_v41 = vrot.slane %v409_v52, %v2303_v35  ;;  %v820_v35 = vsel %vm574_vm11, %v819_v37, %v815_v16  ;;  %v596_v27 = vsel %vm595_vm14, %v594_v55, %v589_v23  ;;  %vm920_vm3 = vcmask 64512   ;;  %v1642_v37 = vld [vmem:[#allocation2 + $0x28] sm:$0xff] }
 0x118   :  { %v252_v59 = vpop.xlane.xlu0 %251  ;;  %v395_v50 = vmul.f32 0.00390625, %v297_v58  ;;  %v603_v5 = vsel %vm602_vm15, %v601_v26, %v596_v27  ;;  %v919_v58 = vld [vmem:[%s2283_s2] sm:$0xff]  ;;  %v1002_v13 = vsub.s32 0, %v1977_v1  ;;  %v1069_v49 = vsub.s32 1, %v1977_v1  ;;  %v1644_v55 = vld [vmem:[#allocation2 + $0x48] sm:$0xff]  ;;  %s1819_s2 = smov [#allocation5]  }
 0x119   :  { %v380_v61 = vmul.f32 0.00390625, %v252_v59  ;;  %v825_v57 = vsel %vm581_vm12, %v824_v41, %v820_v35  ;;  %1598 = vmatpush3.msra.mxu1 %v919_v58  ;;  %v1203_v28 = vsub.s32 3, %v1977_v1  ;;  %v1655_v58 = vld [vmem:[#allocation2 + $0xa0] sm:$0xff]  ;;  %s1529_s5 = sshll.u32 %s1819_s2, 4  ;;  %s1530_s5 = int_to_ptr.vmem [resolvable:$true] %s1529_s5 }
 0x11a   :  { %v755_v31 = vrot.slane %v395_v50, %v2305_v24  ;;  %s1787_s6 = scalar_lea.vmem %s1530_s5, 16384  ;;  %p1792_p9 = scmp.lt.s32.totalorder %s1530_s5, %s1530_s5 }
 0x11b   :  { %v300_v62 = vpop.xlane.xlu1 %299  ;;  %v681_v9 = vrot.slane %v380_v61, %v2075_v40  ;;  %v1136_v61 = vsub.s32 2, %v1977_v1  ;;  %p1788_p8 = scmp.ne.s32.totalorder %s1530_s5, %s1787_s6  ;;  %p1793_p10 = scmp.lt.s32.totalorder %s1787_s6, %s1787_s6 }
 0x11c   :  { %v396_v7 = vmul.f32 0.00390625, %v300_v62  ;;  %v342_v8 = vpop.xlane.xlu0 %341  ;;  %v756_v3 = vsel %vm595_vm14, %v755_v31, %v751_v21  ;;  %v1637_v62 = vld [vmem:[#allocation2 + $0x10] sm:$0xff]  ;;  %v1648_v21 = vld [vmem:[#allocation2 + $0x68] sm:$0xff] }
 0x11d   :  { %v410_v36 = vmul.f32 0.00390625, %v342_v8  ;;  %v682_v42 = vsel %vm602_vm15, %v681_v9, %v677_v56  ;;  %v1643_v9 = vld [vmem:[#allocation2 + $0x40] sm:$0xff]  ;;  %p1794_p11 = por %p1793_p10, %p1792_p9 }
 0x11e   :  { %v760_v54 = vrot.slane %v396_v7, %v2075_v40  ;;  %v842_v4 = vsel %vm841_vm0, %v682_v42, %v603_v5  ;;  %v1639_v7 = vld [vmem:[#allocation2] sm:$0xff] }
 0x11f   :  { %v348_v19 = vpop.xlane.xlu1 %347  ;;  %v829_v17 = vrot.slane %v410_v36, %v2304_v48  ;;  %v1641_v36 = vld [vmem:[#allocation2 + $0x20] sm:$0xff]  ;;  %p1795_p12 = pnand %p1794_p11, %p1788_p8 }
 0x120   :  { %v345_v33 = vpop.xlane.xlu0 %344  ;;  %v412_v25 = vmul.f32 0.00390625, %v348_v19  ;;  %v761_v12 = vsel %vm602_vm15, %v760_v54, %v756_v3  ;;  %v1649_v3 = vld [vmem:[#allocation2 + $0x50] sm:$0xff] }
 0x121   :  { %v411_v30 = vmul.f32 0.00390625, %v345_v33  ;;  %v830_v43 = vsel %vm588_vm13, %v829_v17, %v825_v57  ;;  %v1646_v17 = vld [vmem:[#allocation2 + $0x38] sm:$0xff]  ;;  %v1651_v57 = vld [vmem:[#allocation2 + $0x80] sm:$0xff] }
 0x122   :  { %v839_v29 = vrot.slane %v412_v25, %v2075_v40  ;;  %v844_v40 = vsel %vm843_vm1, %v761_v12, %v842_v4  ;;  %v1647_v25 = vld [vmem:[#allocation2 + $0x60] sm:$0xff]  ;;  %v1652_v12 = vld [vmem:[#allocation2 + $0x88] sm:$0xff]  ;;  %v1653_v4 = vld [vmem:[#allocation2 + $0x70] sm:$0xff] }
 0x123   :  { %v834_v34 = vrot.slane %v411_v30, %v2305_v24 }
 0x125   :  { %v835_v22 = vsel %vm595_vm14, %v834_v34, %v830_v43 }
 0x126   :  { %v840_v38 = vsel %vm602_vm15, %v839_v29, %v835_v22  ;;  %v1650_v29 = vld [vmem:[#allocation2 + $0x58] sm:$0xff] }
 0x127   :  { %v846_v63 = vsel %vm845_vm2, %v840_v38, %v844_v40  ;;  %v1654_v40 = vld [vmem:[#allocation2 + $0x78] sm:$0xff] }
 0x128   :  { %1595 = vmatmul.mubr.f32.vlgmr.msra.gmra.mrb[0].mxu0 %v846_v63 }
 0x1fb   :  { %v914_v44 = vpop.f32.mrb[0].mxu0 }
 0x1fc   :  { %v918_v6 = vmax.f32 %v914_v44, 0.0  ;;  %v1596_v15 = vpop.f32.mrb[1].mxu0 }
 0x1fe   :  { %1600 = vmatmul.mubr.msk.f32.vlgmr.msra.gmra.mrb[0].mxu1 %vm920_vm3, %v918_v6  ;;  %v1656_v6 = vld [vmem:[#allocation2 + $0xa8] sm:$0xff] }
 0x2d1   :  { %v990_v39 = vpop.f32.mrb[0].mxu1 }
 0x2d2   :  { %v1542_v59 = vmul.f32 -1.442695, %v990_v39  ;;  %v1601_v46 = vpop.f32.mrb[1].mxu1 }
 0x2d3   :  { %v1657_v46 = vld [vmem:[#allocation2 + $0x90] sm:$0xff] }
 0x2d4   :  { %1633 = vpow2.f32 %v1542_v59 }
 0x2de   :  { %v1634_v45 = vpop.eup %1633 }
 0x2df   :  { %v997_v47 = vadd.f32 1.0, %v1634_v45 }
 0x2e1   :  { %1635 = vrcp.f32 %v997_v47  ;;  %v1658_v47 = vld [vmem:[#allocation2 + $0x98] sm:$0xff] }
 0x2eb   :  { %v1636_v48 = vpop.eup %1635 }
 0x2ec   :  { %v1003_v20 = vrot.slane %v1636_v48, %v1002_v13  ;;  %v1070_v50 = vrot.slane %v1636_v48, %v1069_v49  ;;  %v1137_v18 = vrot.slane %v1636_v48, %v1136_v61  ;;  %v2248_v51 = vrot.slane %v1636_v48, %v1203_v28  ;;  %v1659_v48 = vld [vmem:[#allocation2 + $0xc0] sm:$0xff]  ;;  %v1660_v49 = vld [vmem:[#allocation2 + $0xc8] sm:$0xff]  ;;  %v1661_v28 = vld [vmem:[#allocation2 + $0xb0] sm:$0xff] }
 0x2ee   :  { %1009 = vbcast.lane.b32.xlu1 %v1003_v20, 264  ;;  %1005 = vbcast.lane.b32.xlu0 %v1003_v20, 256 }
 0x2f2   :  { %1013 = vbcast.lane.b32.xlu1 %v1003_v20, 272  ;;  %1021 = vbcast.lane.b32.xlu0 %v1003_v20, 288 }
 0x2f6   :  { %1017 = vbcast.lane.b32.xlu1 %v1003_v20, 280  ;;  %1029 = vbcast.lane.b32.xlu0 %v1003_v20, 304 }
 0x2fa   :  { %1025 = vbcast.lane.b32.xlu1 %v1003_v20, 296  ;;  %1037 = vbcast.lane.b32.xlu0 %v1003_v20, 320 }
 0x2fe   :  { %1033 = vbcast.lane.b32.xlu1 %v1003_v20, 312  ;;  %1045 = vbcast.lane.b32.xlu0 %v1003_v20, 336 }
 0x302   :  { %1041 = vbcast.lane.b32.xlu1 %v1003_v20, 328  ;;  %1053 = vbcast.lane.b32.xlu0 %v1003_v20, 352 }
 0x306   :  { %1049 = vbcast.lane.b32.xlu1 %v1003_v20, 344  ;;  %1061 = vbcast.lane.b32.xlu0 %v1003_v20, 368 }
 0x30a   :  { %1057 = vbcast.lane.b32.xlu1 %v1003_v20, 360  ;;  %1072 = vbcast.lane.b32.xlu0 %v1070_v50, 256 }
 0x30e   :  { %1065 = vbcast.lane.b32.xlu1 %v1003_v20, 376  ;;  %1080 = vbcast.lane.b32.xlu0 %v1070_v50, 272 }
 0x312   :  { %1076 = vbcast.lane.b32.xlu1 %v1070_v50, 264  ;;  %1088 = vbcast.lane.b32.xlu0 %v1070_v50, 288 }
 0x316   :  { %1084 = vbcast.lane.b32.xlu1 %v1070_v50, 280  ;;  %1096 = vbcast.lane.b32.xlu0 %v1070_v50, 304 }
 0x31a   :  { %1092 = vbcast.lane.b32.xlu1 %v1070_v50, 296  ;;  %1104 = vbcast.lane.b32.xlu0 %v1070_v50, 320 }
 0x31e   :  { %1100 = vbcast.lane.b32.xlu1 %v1070_v50, 312  ;;  %1112 = vbcast.lane.b32.xlu0 %v1070_v50, 336 }
 0x322   :  { %1108 = vbcast.lane.b32.xlu1 %v1070_v50, 328  ;;  %1120 = vbcast.lane.b32.xlu0 %v1070_v50, 352 }
 0x326   :  { %1116 = vbcast.lane.b32.xlu1 %v1070_v50, 344  ;;  %1128 = vbcast.lane.b32.xlu0 %v1070_v50, 368 }
 0x32a   :  { %1124 = vbcast.lane.b32.xlu1 %v1070_v50, 360  ;;  %1139 = vbcast.lane.b32.xlu0 %v1137_v18, 256 }
 0x32e   :  { %1132 = vbcast.lane.b32.xlu1 %v1070_v50, 376  ;;  %1147 = vbcast.lane.b32.xlu0 %v1137_v18, 272 }
 0x332   :  { %1143 = vbcast.lane.b32.xlu1 %v1137_v18, 264  ;;  %1155 = vbcast.lane.b32.xlu0 %v1137_v18, 288 }
 0x336   :  { %1151 = vbcast.lane.b32.xlu1 %v1137_v18, 280  ;;  %1163 = vbcast.lane.b32.xlu0 %v1137_v18, 304 }
 0x33a   :  { %1159 = vbcast.lane.b32.xlu1 %v1137_v18, 296  ;;  %1171 = vbcast.lane.b32.xlu0 %v1137_v18, 320 }
 0x33e   :  { %1167 = vbcast.lane.b32.xlu1 %v1137_v18, 312  ;;  %1179 = vbcast.lane.b32.xlu0 %v1137_v18, 336 }
 0x342   :  { %1175 = vbcast.lane.b32.xlu1 %v1137_v18, 328  ;;  %1187 = vbcast.lane.b32.xlu0 %v1137_v18, 352 }
 0x346   :  { %1183 = vbcast.lane.b32.xlu1 %v1137_v18, 344  ;;  %1195 = vbcast.lane.b32.xlu0 %v1137_v18, 368 }
 0x34a   :  { %1191 = vbcast.lane.b32.xlu1 %v1137_v18, 360  ;;  %1206 = vbcast.lane.b32.xlu0 %v2248_v51, 256 }
 0x34e   :  { %1199 = vbcast.lane.b32.xlu1 %v1137_v18, 376  ;;  %1214 = vbcast.lane.b32.xlu0 %v2248_v51, 272 }
 0x352   :  { %1210 = vbcast.lane.b32.xlu1 %v2248_v51, 264  ;;  %1222 = vbcast.lane.b32.xlu0 %v2248_v51, 288 }
 0x356   :  { %1218 = vbcast.lane.b32.xlu1 %v2248_v51, 280  ;;  %1230 = vbcast.lane.b32.xlu0 %v2248_v51, 304 }
 0x35a   :  { %1226 = vbcast.lane.b32.xlu1 %v2248_v51, 296  ;;  %1238 = vbcast.lane.b32.xlu0 %v2248_v51, 320 }
 0x35e   :  { %1234 = vbcast.lane.b32.xlu1 %v2248_v51, 312  ;;  %1246 = vbcast.lane.b32.xlu0 %v2248_v51, 336 }
 0x360   :  { %v1010_v1 = vpop.permute.xlu1 %1009  ;;  %v1006_v52 = vpop.permute.xlu0 %1005 }
 0x361   :  { %v1270_v14 = vmul.f32 %v1637_v62, %v1010_v1  ;;  %v1271_v2 = vmul.f32 %v1638_v0, %v1010_v1  ;;  %v1268_v8 = vmul.f32 %v1639_v7, %v1006_v52  ;;  %v1269_v11 = vmul.f32 %v1640_v10, %v1006_v52  ;;  %v1662_v1 = vld [vmem:[#allocation2 + $0xb8] sm:$0xff]  ;;  %v1663_v62 = vld [vmem:[#allocation2 + $0xe0] sm:$0xff]  ;;  %v1664_v0 = vld [vmem:[#allocation2 + $0xe8] sm:$0xff] }
 0x362   :  { %1242 = vbcast.lane.b32.xlu1 %v2248_v51, 328  ;;  %1254 = vbcast.lane.b32.xlu0 %v2248_v51, 352  ;;  %v1665_v10 = vld [vmem:[#allocation2 + $0xd0] sm:$0xff] }
 0x363   :  { %1398 = vst [vmem:[#allocation5 + $0x10] sm:$0xff] %v1270_v14  ;;  %1399 = vst [vmem:[#allocation5 + $0x18] sm:$0xff] %v1271_v2 }
 0x364   :  { %1396 = vst [vmem:[#allocation5] sm:$0xff] %v1268_v8  ;;  %1397 = vst [vmem:[#allocation5 + $0x8] sm:$0xff] %v1269_v11  ;;  %v1014_v24 = vpop.permute.xlu1 %1013  ;;  %v1022_v53 = vpop.permute.xlu0 %1021 }
 0x365   :  { %v1272_v23 = vmul.f32 %v1641_v36, %v1014_v24  ;;  %v1273_v31 = vmul.f32 %v1642_v37, %v1014_v24  ;;  %v1276_v32 = vmul.f32 %v1643_v9, %v1022_v53  ;;  %v1277_v41 = vmul.f32 %v1644_v55, %v1022_v53  ;;  %v1666_v24 = vld [vmem:[#allocation2 + $0xd8] sm:$0xff]  ;;  %v1667_v36 = vld [vmem:[#allocation2 + $0x100] sm:$0xff]  ;;  %v1668_v37 = vld [vmem:[#allocation2 + $0x108] sm:$0xff] }
 0x366   :  { %1250 = vbcast.lane.b32.xlu1 %v2248_v51, 344  ;;  %1262 = vbcast.lane.b32.xlu0 %v2248_v51, 368  ;;  %v1669_v55 = vld [vmem:[#allocation2 + $0xf0] sm:$0xff] }
 0x367   :  { %1400 = vst [vmem:[#allocation5 + $0x20] sm:$0xff] %v1272_v23  ;;  %1401 = vst [vmem:[#allocation5 + $0x28] sm:$0xff] %v1273_v31 }
 0x368   :  { %1404 = vst [vmem:[#allocation5 + $0x40] sm:$0xff] %v1276_v32  ;;  %1405 = vst [vmem:[#allocation5 + $0x48] sm:$0xff] %v1277_v41  ;;  %v1018_v54 = vpop.permute.xlu1 %1017  ;;  %v1030_v19 = vpop.permute.xlu0 %1029 }
 0x369   :  { %v1274_v26 = vmul.f32 %v1645_v60, %v1018_v54  ;;  %v1275_v33 = vmul.f32 %v1646_v17, %v1018_v54  ;;  %v1280_v16 = vmul.f32 %v1647_v25, %v1030_v19  ;;  %v1281_v56 = vmul.f32 %v1648_v21, %v1030_v19  ;;  %v1670_v54 = vld [vmem:[#allocation2 + $0xf8] sm:$0xff]  ;;  %v1671_v60 = vld [vmem:[#allocation2 + $0x120] sm:$0xff]  ;;  %v1672_v17 = vld [vmem:[#allocation2 + $0x128] sm:$0xff] }
 0x36a   :  { %1258 = vbcast.lane.b32.xlu1 %v2248_v51, 360  ;;  %v1673_v21 = vld [vmem:[#allocation2 + $0x110] sm:$0xff] }
 0x36b   :  { %1402 = vst [vmem:[#allocation5 + $0x30] sm:$0xff] %v1274_v26  ;;  %1403 = vst [vmem:[#allocation5 + $0x38] sm:$0xff] %v1275_v33 }
 0x36c   :  { %1408 = vst [vmem:[#allocation5 + $0x60] sm:$0xff] %v1280_v16  ;;  %1409 = vst [vmem:[#allocation5 + $0x68] sm:$0xff] %v1281_v56  ;;  %v1026_v30 = vpop.permute.xlu1 %1025  ;;  %v1038_v35 = vpop.permute.xlu0 %1037 }
 0x36d   :  { %v1278_v42 = vmul.f32 %v1649_v3, %v1026_v30  ;;  %v1279_v27 = vmul.f32 %v1650_v29, %v1026_v30  ;;  %v1284_v34 = vmul.f32 %v1651_v57, %v1038_v35  ;;  %v1285_v5 = vmul.f32 %v1652_v12, %v1038_v35  ;;  %v1674_v30 = vld [vmem:[#allocation2 + $0x118] sm:$0xff]  ;;  %v1675_v3 = vld [vmem:[#allocation2 + $0x140] sm:$0xff]  ;;  %v1676_v29 = vld [vmem:[#allocation2 + $0x148] sm:$0xff] }
 0x36e   :  { %1266 = vbcast.lane.b32.xlu1 %v2248_v51, 376  ;;  %v1677_v12 = vld [vmem:[#allocation2 + $0x130] sm:$0xff] }
 0x36f   :  { %1406 = vst [vmem:[#allocation5 + $0x50] sm:$0xff] %v1278_v42  ;;  %1407 = vst [vmem:[#allocation5 + $0x58] sm:$0xff] %v1279_v27 }
 0x370   :  { %1412 = vst [vmem:[#allocation5 + $0x80] sm:$0xff] %v1284_v34  ;;  %1413 = vst [vmem:[#allocation5 + $0x88] sm:$0xff] %v1285_v5  ;;  %v1034_v43 = vpop.permute.xlu1 %1033  ;;  %v1046_v22 = vpop.permute.xlu0 %1045 }
 0x371   :  { %v1282_v38 = vmul.f32 %v1653_v4, %v1034_v43  ;;  %v1283_v63 = vmul.f32 %v1654_v40, %v1034_v43  ;;  %v1288_v44 = vmul.f32 %v1655_v58, %v1046_v22  ;;  %v1289_v15 = vmul.f32 %v1656_v6, %v1046_v22  ;;  %v1678_v43 = vld [vmem:[#allocation2 + $0x138] sm:$0xff]  ;;  %v1679_v4 = vld [vmem:[#allocation2 + $0x160] sm:$0xff]  ;;  %v1680_v40 = vld [vmem:[#allocation2 + $0x168] sm:$0xff] }
 0x372   :  { %v1681_v6 = vld [vmem:[#allocation2 + $0x150] sm:$0xff] }
 0x373   :  { %1410 = vst [vmem:[#allocation5 + $0x70] sm:$0xff] %v1282_v38  ;;  %1411 = vst [vmem:[#allocation5 + $0x78] sm:$0xff] %v1283_v63 }
 0x374   :  { %1416 = vst [vmem:[#allocation5 + $0xa0] sm:$0xff] %v1288_v44  ;;  %1417 = vst [vmem:[#allocation5 + $0xa8] sm:$0xff] %v1289_v15  ;;  %v1042_v39 = vpop.permute.xlu1 %1041  ;;  %v1054_v59 = vpop.permute.xlu0 %1053 }
 0x375   :  { %v1286_v45 = vmul.f32 %v1657_v46, %v1042_v39  ;;  %v1287_v13 = vmul.f32 %v1658_v47, %v1042_v39  ;;  %v1292_v20 = vmul.f32 %v1659_v48, %v1054_v59  ;;  %v1293_v50 = vmul.f32 %v1660_v49, %v1054_v59  ;;  %v1682_v39 = vld [vmem:[#allocation2 + $0x158] sm:$0xff]  ;;  %v1683_v46 = vld [vmem:[#allocation2 + $0x180] sm:$0xff]  ;;  %v1684_v47 = vld [vmem:[#allocation2 + $0x188] sm:$0xff] }
 0x376   :  { %v1685_v49 = vld [vmem:[#allocation2 + $0x170] sm:$0xff] }
 0x377   :  { %1414 = vst [vmem:[#allocation5 + $0x90] sm:$0xff] %v1286_v45  ;;  %1415 = vst [vmem:[#allocation5 + $0x98] sm:$0xff] %v1287_v13 }
 0x378   :  { %1420 = vst [vmem:[#allocation5 + $0xc0] sm:$0xff] %v1292_v20  ;;  %1421 = vst [vmem:[#allocation5 + $0xc8] sm:$0xff] %v1293_v50  ;;  %v1050_v61 = vpop.permute.xlu1 %1049  ;;  %v1062_v18 = vpop.permute.xlu0 %1061 }
 0x379   :  { %v1290_v51 = vmul.f32 %v1661_v28, %v1050_v61  ;;  %v1291_v52 = vmul.f32 %v1662_v1, %v1050_v61  ;;  %v1296_v14 = vmul.f32 %v1663_v62, %v1062_v18  ;;  %v1297_v2 = vmul.f32 %v1664_v0, %v1062_v18  ;;  %v1686_v61 = vld [vmem:[#allocation2 + $0x178] sm:$0xff]  ;;  %v1687_v28 = vld [vmem:[#allocation2 + $0x1a0] sm:$0xff]  ;;  %v1688_v1 = vld [vmem:[#allocation2 + $0x1a8] sm:$0xff] }
 0x37a   :  { %v1689_v0 = vld [vmem:[#allocation2 + $0x190] sm:$0xff] }
 0x37b   :  { %1418 = vst [vmem:[#allocation5 + $0xb0] sm:$0xff] %v1290_v51  ;;  %1419 = vst [vmem:[#allocation5 + $0xb8] sm:$0xff] %v1291_v52 }
 0x37c   :  { %1424 = vst [vmem:[#allocation5 + $0xe0] sm:$0xff] %v1296_v14  ;;  %1425 = vst [vmem:[#allocation5 + $0xe8] sm:$0xff] %v1297_v2  ;;  %v1058_v7 = vpop.permute.xlu1 %1057  ;;  %v1073_v8 = vpop.permute.xlu0 %1072 }
 0x37d   :  { %v1294_v11 = vmul.f32 %v1665_v10, %v1058_v7  ;;  %v1295_v53 = vmul.f32 %v1666_v24, %v1058_v7  ;;  %v1300_v23 = vmul.f32 %v1667_v36, %v1073_v8  ;;  %v1301_v31 = vmul.f32 %v1668_v37, %v1073_v8  ;;  %v1690_v7 = vld [vmem:[#allocation2 + $0x198] sm:$0xff]  ;;  %v1691_v10 = vld [vmem:[#allocation2 + $0x1c0] sm:$0xff]  ;;  %v1692_v24 = vld [vmem:[#allocation2 + $0x1c8] sm:$0xff] }
 0x37e   :  { %v1693_v37 = vld [vmem:[#allocation2 + $0x1b0] sm:$0xff] }
 0x37f   :  { %1422 = vst [vmem:[#allocation5 + $0xd0] sm:$0xff] %v1294_v11  ;;  %1423 = vst [vmem:[#allocation5 + $0xd8] sm:$0xff] %v1295_v53 }
 0x380   :  { %1428 = vst [vmem:[#allocation5 + $0x100] sm:$0xff] %v1300_v23  ;;  %1429 = vst [vmem:[#allocation5 + $0x108] sm:$0xff] %v1301_v31  ;;  %v1066_v9 = vpop.permute.xlu1 %1065  ;;  %v1081_v32 = vpop.permute.xlu0 %1080 }
 0x381   :  { %v1298_v41 = vmul.f32 %v1669_v55, %v1066_v9  ;;  %v1299_v19 = vmul.f32 %v1670_v54, %v1066_v9  ;;  %v1304_v26 = vmul.f32 %v1671_v60, %v1081_v32  ;;  %v1305_v33 = vmul.f32 %v1672_v17, %v1081_v32  ;;  %v1694_v9 = vld [vmem:[#allocation2 + $0x1b8] sm:$0xff]  ;;  %v1695_v55 = vld [vmem:[#allocation2 + $0x1e0] sm:$0xff]  ;;  %v1696_v54 = vld [vmem:[#allocation2 + $0x1e8] sm:$0xff] }
 0x382   :  { %v1697_v17 = vld [vmem:[#allocation2 + $0x1d0] sm:$0xff] }
 0x383   :  { %1426 = vst [vmem:[#allocation5 + $0xf0] sm:$0xff] %v1298_v41  ;;  %1427 = vst [vmem:[#allocation5 + $0xf8] sm:$0xff] %v1299_v19 }
 0x384   :  { %1432 = vst [vmem:[#allocation5 + $0x120] sm:$0xff] %v1304_v26  ;;  %1433 = vst [vmem:[#allocation5 + $0x128] sm:$0xff] %v1305_v33  ;;  %v1077_v25 = vpop.permute.xlu1 %1076  ;;  %v1089_v16 = vpop.permute.xlu0 %1088 }
 0x385   :  { %v1302_v56 = vmul.f32 %v1673_v21, %v1077_v25  ;;  %v1303_v35 = vmul.f32 %v1674_v30, %v1077_v25  ;;  %v1308_v42 = vmul.f32 %v1675_v3, %v1089_v16  ;;  %v1309_v27 = vmul.f32 %v1676_v29, %v1089_v16  ;;  %v1698_v25 = vld [vmem:[#allocation2 + $0x1d8] sm:$0xff]  ;;  %v1699_v21 = vld [vmem:[#allocation2 + $0x200] sm:$0xff]  ;;  %v1700_v30 = vld [vmem:[#allocation2 + $0x208] sm:$0xff] }
 0x386   :  { %v1701_v29 = vld [vmem:[#allocation2 + $0x1f0] sm:$0xff] }
 0x387   :  { %1430 = vst [vmem:[#allocation5 + $0x110] sm:$0xff] %v1302_v56  ;;  %1431 = vst [vmem:[#allocation5 + $0x118] sm:$0xff] %v1303_v35 }
 0x388   :  { %1436 = vst [vmem:[#allocation5 + $0x140] sm:$0xff] %v1308_v42  ;;  %1437 = vst [vmem:[#allocation5 + $0x148] sm:$0xff] %v1309_v27  ;;  %v1085_v57 = vpop.permute.xlu1 %1084  ;;  %v1097_v34 = vpop.permute.xlu0 %1096 }
 0x389   :  { %v1306_v5 = vmul.f32 %v1677_v12, %v1085_v57  ;;  %v1307_v22 = vmul.f32 %v1678_v43, %v1085_v57  ;;  %v1312_v38 = vmul.f32 %v1679_v4, %v1097_v34  ;;  %v1313_v63 = vmul.f32 %v1680_v40, %v1097_v34  ;;  %v1702_v57 = vld [vmem:[#allocation2 + $0x1f8] sm:$0xff]  ;;  %v1703_v12 = vld [vmem:[#allocation2 + $0x220] sm:$0xff]  ;;  %v1704_v43 = vld [vmem:[#allocation2 + $0x228] sm:$0xff] }
 0x38a   :  { %v1705_v40 = vld [vmem:[#allocation2 + $0x210] sm:$0xff] }
 0x38b   :  { %1434 = vst [vmem:[#allocation5 + $0x130] sm:$0xff] %v1306_v5  ;;  %1435 = vst [vmem:[#allocation5 + $0x138] sm:$0xff] %v1307_v22 }
 0x38c   :  { %1440 = vst [vmem:[#allocation5 + $0x160] sm:$0xff] %v1312_v38  ;;  %1441 = vst [vmem:[#allocation5 + $0x168] sm:$0xff] %v1313_v63  ;;  %v1093_v58 = vpop.permute.xlu1 %1092  ;;  %v1105_v44 = vpop.permute.xlu0 %1104 }
 0x38d   :  { %v1310_v15 = vmul.f32 %v1681_v6, %v1093_v58  ;;  %v1311_v59 = vmul.f32 %v1682_v39, %v1093_v58  ;;  %v1316_v45 = vmul.f32 %v1683_v46, %v1105_v44  ;;  %v1317_v13 = vmul.f32 %v1684_v47, %v1105_v44  ;;  %v1706_v58 = vld [vmem:[#allocation2 + $0x218] sm:$0xff]  ;;  %v1707_v6 = vld [vmem:[#allocation2 + $0x240] sm:$0xff]  ;;  %v1708_v39 = vld [vmem:[#allocation2 + $0x248] sm:$0xff] }
 0x38e   :  { %v1709_v47 = vld [vmem:[#allocation2 + $0x230] sm:$0xff] }
 0x38f   :  { %1438 = vst [vmem:[#allocation5 + $0x150] sm:$0xff] %v1310_v15  ;;  %1439 = vst [vmem:[#allocation5 + $0x158] sm:$0xff] %v1311_v59 }
 0x390   :  { %1444 = vst [vmem:[#allocation5 + $0x180] sm:$0xff] %v1316_v45  ;;  %1445 = vst [vmem:[#allocation5 + $0x188] sm:$0xff] %v1317_v13  ;;  %v1101_v48 = vpop.permute.xlu1 %1100  ;;  %v1113_v20 = vpop.permute.xlu0 %1112 }
 0x391   :  { %v1314_v50 = vmul.f32 %v1685_v49, %v1101_v48  ;;  %v1315_v18 = vmul.f32 %v1686_v61, %v1101_v48  ;;  %v1320_v51 = vmul.f32 %v1687_v28, %v1113_v20  ;;  %v1321_v52 = vmul.f32 %v1688_v1, %v1113_v20  ;;  %v1710_v48 = vld [vmem:[#allocation2 + $0x238] sm:$0xff]  ;;  %v1711_v49 = vld [vmem:[#allocation2 + $0x260] sm:$0xff]  ;;  %v1712_v61 = vld [vmem:[#allocation2 + $0x268] sm:$0xff] }
 0x392   :  { %v1713_v1 = vld [vmem:[#allocation2 + $0x250] sm:$0xff] }
 0x393   :  { %1442 = vst [vmem:[#allocation5 + $0x170] sm:$0xff] %v1314_v50  ;;  %1443 = vst [vmem:[#allocation5 + $0x178] sm:$0xff] %v1315_v18 }
 0x394   :  { %1448 = vst [vmem:[#allocation5 + $0x1a0] sm:$0xff] %v1320_v51  ;;  %1449 = vst [vmem:[#allocation5 + $0x1a8] sm:$0xff] %v1321_v52  ;;  %v1109_v62 = vpop.permute.xlu1 %1108  ;;  %v1121_v14 = vpop.permute.xlu0 %1120 }
 0x395   :  { %v1318_v2 = vmul.f32 %v1689_v0, %v1109_v62  ;;  %v1319_v8 = vmul.f32 %v1690_v7, %v1109_v62  ;;  %v1324_v11 = vmul.f32 %v1691_v10, %v1121_v14  ;;  %v1325_v53 = vmul.f32 %v1692_v24, %v1121_v14  ;;  %v1714_v62 = vld [vmem:[#allocation2 + $0x258] sm:$0xff]  ;;  %v1715_v0 = vld [vmem:[#allocation2 + $0x280] sm:$0xff]  ;;  %v1716_v7 = vld [vmem:[#allocation2 + $0x288] sm:$0xff] }
 0x396   :  { %v1717_v24 = vld [vmem:[#allocation2 + $0x270] sm:$0xff] }
 0x397   :  { %1446 = vst [vmem:[#allocation5 + $0x190] sm:$0xff] %v1318_v2  ;;  %1447 = vst [vmem:[#allocation5 + $0x198] sm:$0xff] %v1319_v8 }
 0x398   :  { %1452 = vst [vmem:[#allocation5 + $0x1c0] sm:$0xff] %v1324_v11  ;;  %1453 = vst [vmem:[#allocation5 + $0x1c8] sm:$0xff] %v1325_v53  ;;  %v1117_v36 = vpop.permute.xlu1 %1116  ;;  %v1129_v23 = vpop.permute.xlu0 %1128 }
 0x399   :  { %v1322_v31 = vmul.f32 %v1693_v37, %v1117_v36  ;;  %v1323_v32 = vmul.f32 %v1694_v9, %v1117_v36  ;;  %v1328_v41 = vmul.f32 %v1695_v55, %v1129_v23  ;;  %v1329_v19 = vmul.f32 %v1696_v54, %v1129_v23  ;;  %v1718_v36 = vld [vmem:[#allocation2 + $0x278] sm:$0xff]  ;;  %v1719_v37 = vld [vmem:[#allocation2 + $0x2a0] sm:$0xff]  ;;  %v1720_v9 = vld [vmem:[#allocation2 + $0x2a8] sm:$0xff] }
 0x39a   :  { %v1721_v54 = vld [vmem:[#allocation2 + $0x290] sm:$0xff] }
 0x39b   :  { %1450 = vst [vmem:[#allocation5 + $0x1b0] sm:$0xff] %v1322_v31  ;;  %1451 = vst [vmem:[#allocation5 + $0x1b8] sm:$0xff] %v1323_v32 }
 0x39c   :  { %1456 = vst [vmem:[#allocation5 + $0x1e0] sm:$0xff] %v1328_v41  ;;  %1457 = vst [vmem:[#allocation5 + $0x1e8] sm:$0xff] %v1329_v19  ;;  %v1125_v60 = vpop.permute.xlu1 %1124  ;;  %v1140_v26 = vpop.permute.xlu0 %1139 }
 0x39d   :  { %v1326_v33 = vmul.f32 %v1697_v17, %v1125_v60  ;;  %v1327_v16 = vmul.f32 %v1698_v25, %v1125_v60  ;;  %v1332_v56 = vmul.f32 %v1699_v21, %v1140_v26  ;;  %v1333_v35 = vmul.f32 %v1700_v30, %v1140_v26  ;;  %v1722_v60 = vld [vmem:[#allocation2 + $0x298] sm:$0xff]  ;;  %v1723_v17 = vld [vmem:[#allocation2 + $0x2c0] sm:$0xff]  ;;  %v1724_v25 = vld [vmem:[#allocation2 + $0x2c8] sm:$0xff] }
 0x39e   :  { %v1725_v30 = vld [vmem:[#allocation2 + $0x2b0] sm:$0xff] }
 0x39f   :  { %1454 = vst [vmem:[#allocation5 + $0x1d0] sm:$0xff] %v1326_v33  ;;  %1455 = vst [vmem:[#allocation5 + $0x1d8] sm:$0xff] %v1327_v16 }
 0x3a0   :  { %1460 = vst [vmem:[#allocation5 + $0x200] sm:$0xff] %v1332_v56  ;;  %1461 = vst [vmem:[#allocation5 + $0x208] sm:$0xff] %v1333_v35  ;;  %v1133_v3 = vpop.permute.xlu1 %1132  ;;  %v1148_v42 = vpop.permute.xlu0 %1147 }
 0x3a1   :  { %v1330_v27 = vmul.f32 %v1701_v29, %v1133_v3  ;;  %v1331_v34 = vmul.f32 %v1702_v57, %v1133_v3  ;;  %v1336_v5 = vmul.f32 %v1703_v12, %v1148_v42  ;;  %v1337_v22 = vmul.f32 %v1704_v43, %v1148_v42  ;;  %v1726_v3 = vld [vmem:[#allocation2 + $0x2b8] sm:$0xff]  ;;  %v1727_v29 = vld [vmem:[#allocation2 + $0x2e0] sm:$0xff]  ;;  %v1728_v57 = vld [vmem:[#allocation2 + $0x2e8] sm:$0xff] }
 0x3a2   :  { %v1729_v43 = vld [vmem:[#allocation2 + $0x2d0] sm:$0xff] }
 0x3a3   :  { %1458 = vst [vmem:[#allocation5 + $0x1f0] sm:$0xff] %v1330_v27  ;;  %1459 = vst [vmem:[#allocation5 + $0x1f8] sm:$0xff] %v1331_v34 }
 0x3a4   :  { %1464 = vst [vmem:[#allocation5 + $0x220] sm:$0xff] %v1336_v5  ;;  %1465 = vst [vmem:[#allocation5 + $0x228] sm:$0xff] %v1337_v22  ;;  %v1144_v4 = vpop.permute.xlu1 %1143  ;;  %v1156_v38 = vpop.permute.xlu0 %1155 }
 0x3a5   :  { %v1334_v63 = vmul.f32 %v1705_v40, %v1144_v4  ;;  %v1335_v44 = vmul.f32 %v1706_v58, %v1144_v4  ;;  %v1340_v15 = vmul.f32 %v1707_v6, %v1156_v38  ;;  %v1341_v59 = vmul.f32 %v1708_v39, %v1156_v38  ;;  %v1730_v4 = vld [vmem:[#allocation2 + $0x2d8] sm:$0xff]  ;;  %v1731_v40 = vld [vmem:[#allocation2 + $0x300] sm:$0xff]  ;;  %v1732_v58 = vld [vmem:[#allocation2 + $0x308] sm:$0xff] }
 0x3a6   :  { %v1733_v39 = vld [vmem:[#allocation2 + $0x2f0] sm:$0xff] }
 0x3a7   :  { %1462 = vst [vmem:[#allocation5 + $0x210] sm:$0xff] %v1334_v63  ;;  %1463 = vst [vmem:[#allocation5 + $0x218] sm:$0xff] %v1335_v44 }
 0x3a8   :  { %1468 = vst [vmem:[#allocation5 + $0x240] sm:$0xff] %v1340_v15  ;;  %1469 = vst [vmem:[#allocation5 + $0x248] sm:$0xff] %v1341_v59  ;;  %v1152_v46 = vpop.permute.xlu1 %1151  ;;  %v1164_v45 = vpop.permute.xlu0 %1163 }
 0x3a9   :  { %v1338_v13 = vmul.f32 %v1709_v47, %v1152_v46  ;;  %v1339_v20 = vmul.f32 %v1710_v48, %v1152_v46  ;;  %v1344_v50 = vmul.f32 %v1711_v49, %v1164_v45  ;;  %v1345_v18 = vmul.f32 %v1712_v61, %v1164_v45  ;;  %v1734_v46 = vld [vmem:[#allocation2 + $0x2f8] sm:$0xff]  ;;  %v1735_v47 = vld [vmem:[#allocation2 + $0x320] sm:$0xff]  ;;  %v1736_v48 = vld [vmem:[#allocation2 + $0x328] sm:$0xff] }
 0x3aa   :  { %v1737_v61 = vld [vmem:[#allocation2 + $0x310] sm:$0xff] }
 0x3ab   :  { %1466 = vst [vmem:[#allocation5 + $0x230] sm:$0xff] %v1338_v13  ;;  %1467 = vst [vmem:[#allocation5 + $0x238] sm:$0xff] %v1339_v20 }
 0x3ac   :  { %1472 = vst [vmem:[#allocation5 + $0x260] sm:$0xff] %v1344_v50  ;;  %1473 = vst [vmem:[#allocation5 + $0x268] sm:$0xff] %v1345_v18  ;;  %v1160_v28 = vpop.permute.xlu1 %1159  ;;  %v1172_v51 = vpop.permute.xlu0 %1171 }
 0x3ad   :  { %v1342_v52 = vmul.f32 %v1713_v1, %v1160_v28  ;;  %v1343_v14 = vmul.f32 %v1714_v62, %v1160_v28  ;;  %v1348_v2 = vmul.f32 %v1715_v0, %v1172_v51  ;;  %v1349_v8 = vmul.f32 %v1716_v7, %v1172_v51  ;;  %v1738_v28 = vld [vmem:[#allocation2 + $0x318] sm:$0xff]  ;;  %v1739_v1 = vld [vmem:[#allocation2 + $0x340] sm:$0xff]  ;;  %v1740_v62 = vld [vmem:[#allocation2 + $0x348] sm:$0xff] }
 0x3ae   :  { %v1741_v7 = vld [vmem:[#allocation2 + $0x330] sm:$0xff] }
 0x3af   :  { %1470 = vst [vmem:[#allocation5 + $0x250] sm:$0xff] %v1342_v52  ;;  %1471 = vst [vmem:[#allocation5 + $0x258] sm:$0xff] %v1343_v14 }
 0x3b0   :  { %1476 = vst [vmem:[#allocation5 + $0x280] sm:$0xff] %v1348_v2  ;;  %1477 = vst [vmem:[#allocation5 + $0x288] sm:$0xff] %v1349_v8  ;;  %v1168_v10 = vpop.permute.xlu1 %1167  ;;  %v1180_v11 = vpop.permute.xlu0 %1179 }
 0x3b1   :  { %v1346_v53 = vmul.f32 %v1717_v24, %v1168_v10  ;;  %v1347_v23 = vmul.f32 %v1718_v36, %v1168_v10  ;;  %v1352_v31 = vmul.f32 %v1719_v37, %v1180_v11  ;;  %v1353_v32 = vmul.f32 %v1720_v9, %v1180_v11  ;;  %v1742_v10 = vld [vmem:[#allocation2 + $0x338] sm:$0xff]  ;;  %v1743_v24 = vld [vmem:[#allocation2 + $0x360] sm:$0xff]  ;;  %v1744_v36 = vld [vmem:[#allocation2 + $0x368] sm:$0xff] }
 0x3b2   :  { %v1745_v9 = vld [vmem:[#allocation2 + $0x350] sm:$0xff] }
 0x3b3   :  { %1474 = vst [vmem:[#allocation5 + $0x270] sm:$0xff] %v1346_v53  ;;  %1475 = vst [vmem:[#allocation5 + $0x278] sm:$0xff] %v1347_v23 }
 0x3b4   :  { %1480 = vst [vmem:[#allocation5 + $0x2a0] sm:$0xff] %v1352_v31  ;;  %1481 = vst [vmem:[#allocation5 + $0x2a8] sm:$0xff] %v1353_v32  ;;  %v1176_v55 = vpop.permute.xlu1 %1175  ;;  %v1188_v41 = vpop.permute.xlu0 %1187 }
 0x3b5   :  { %v1350_v19 = vmul.f32 %v1721_v54, %v1176_v55  ;;  %v1351_v26 = vmul.f32 %v1722_v60, %v1176_v55  ;;  %v1356_v33 = vmul.f32 %v1723_v17, %v1188_v41  ;;  %v1357_v16 = vmul.f32 %v1724_v25, %v1188_v41  ;;  %v1746_v55 = vld [vmem:[#allocation2 + $0x358] sm:$0xff]  ;;  %v1747_v54 = vld [vmem:[#allocation2 + $0x380] sm:$0xff]  ;;  %v1748_v60 = vld [vmem:[#allocation2 + $0x388] sm:$0xff] }
 0x3b6   :  { %v1749_v25 = vld [vmem:[#allocation2 + $0x370] sm:$0xff] }
 0x3b7   :  { %1478 = vst [vmem:[#allocation5 + $0x290] sm:$0xff] %v1350_v19  ;;  %1479 = vst [vmem:[#allocation5 + $0x298] sm:$0xff] %v1351_v26 }
 0x3b8   :  { %1484 = vst [vmem:[#allocation5 + $0x2c0] sm:$0xff] %v1356_v33  ;;  %1485 = vst [vmem:[#allocation5 + $0x2c8] sm:$0xff] %v1357_v16  ;;  %v1184_v21 = vpop.permute.xlu1 %1183  ;;  %v1196_v56 = vpop.permute.xlu0 %1195 }
 0x3b9   :  { %v1354_v35 = vmul.f32 %v1725_v30, %v1184_v21  ;;  %v1355_v42 = vmul.f32 %v1726_v3, %v1184_v21  ;;  %v1360_v27 = vmul.f32 %v1727_v29, %v1196_v56  ;;  %v1361_v34 = vmul.f32 %v1728_v57, %v1196_v56  ;;  %v1750_v21 = vld [vmem:[#allocation2 + $0x378] sm:$0xff]  ;;  %v1751_v30 = vld [vmem:[#allocation2 + $0x3a0] sm:$0xff]  ;;  %v1752_v3 = vld [vmem:[#allocation2 + $0x3a8] sm:$0xff] }
 0x3ba   :  { %v1753_v57 = vld [vmem:[#allocation2 + $0x390] sm:$0xff] }
 0x3bb   :  { %1482 = vst [vmem:[#allocation5 + $0x2b0] sm:$0xff] %v1354_v35  ;;  %1483 = vst [vmem:[#allocation5 + $0x2b8] sm:$0xff] %v1355_v42 }
 0x3bc   :  { %1488 = vst [vmem:[#allocation5 + $0x2e0] sm:$0xff] %v1360_v27  ;;  %1489 = vst [vmem:[#allocation5 + $0x2e8] sm:$0xff] %v1361_v34  ;;  %v1192_v12 = vpop.permute.xlu1 %1191  ;;  %v1207_v5 = vpop.permute.xlu0 %1206 }
 0x3bd   :  { %v1358_v22 = vmul.f32 %v1729_v43, %v1192_v12  ;;  %v1359_v38 = vmul.f32 %v1730_v4, %v1192_v12  ;;  %v1364_v63 = vmul.f32 %v1731_v40, %v1207_v5  ;;  %v1365_v44 = vmul.f32 %v1732_v58, %v1207_v5  ;;  %v1754_v12 = vld [vmem:[#allocation2 + $0x398] sm:$0xff]  ;;  %v1755_v43 = vld [vmem:[#allocation2 + $0x3c0] sm:$0xff]  ;;  %v1756_v4 = vld [vmem:[#allocation2 + $0x3c8] sm:$0xff] }
 0x3be   :  { %v1757_v58 = vld [vmem:[#allocation2 + $0x3b0] sm:$0xff] }
 0x3bf   :  { %1486 = vst [vmem:[#allocation5 + $0x2d0] sm:$0xff] %v1358_v22  ;;  %1487 = vst [vmem:[#allocation5 + $0x2d8] sm:$0xff] %v1359_v38 }
 0x3c0   :  { %1492 = vst [vmem:[#allocation5 + $0x300] sm:$0xff] %v1364_v63  ;;  %1493 = vst [vmem:[#allocation5 + $0x308] sm:$0xff] %v1365_v44  ;;  %v1200_v6 = vpop.permute.xlu1 %1199  ;;  %v1215_v15 = vpop.permute.xlu0 %1214 }
 0x3c1   :  { %v1362_v59 = vmul.f32 %v1733_v39, %v1200_v6  ;;  %v1363_v45 = vmul.f32 %v1734_v46, %v1200_v6  ;;  %v1368_v13 = vmul.f32 %v1735_v47, %v1215_v15  ;;  %v1369_v20 = vmul.f32 %v1736_v48, %v1215_v15  ;;  %v1758_v6 = vld [vmem:[#allocation2 + $0x3b8] sm:$0xff]  ;;  %v1759_v39 = vld [vmem:[#allocation2 + $0x3e0] sm:$0xff]  ;;  %v1760_v46 = vld [vmem:[#allocation2 + $0x3e8] sm:$0xff] }
 0x3c3   :  { %1490 = vst [vmem:[#allocation5 + $0x2f0] sm:$0xff] %v1362_v59  ;;  %1491 = vst [vmem:[#allocation5 + $0x2f8] sm:$0xff] %v1363_v45 }
 0x3c4   :  { %1496 = vst [vmem:[#allocation5 + $0x320] sm:$0xff] %v1368_v13  ;;  %1497 = vst [vmem:[#allocation5 + $0x328] sm:$0xff] %v1369_v20  ;;  %v1211_v49 = vpop.permute.xlu1 %1210  ;;  %v1223_v50 = vpop.permute.xlu0 %1222  ;;  %v1761_v13 = vld [vmem:[#allocation2 + $0x3d0] sm:$0xff]  ;;  %v1762_v20 = vld [vmem:[#allocation2 + $0x3d8] sm:$0xff] }
 0x3c5   :  { %v1366_v18 = vmul.f32 %v1737_v61, %v1211_v49  ;;  %v1367_v51 = vmul.f32 %v1738_v28, %v1211_v49  ;;  %v1372_v52 = vmul.f32 %v1739_v1, %v1223_v50  ;;  %v1373_v14 = vmul.f32 %v1740_v62, %v1223_v50  ;;  %v1763_v61 = vld [vmem:[#allocation2 + $0x3f0] sm:$0xff]  ;;  %v1764_v28 = vld [vmem:[#allocation2 + $0x3f8] sm:$0xff] }
 0x3c7   :  { %1494 = vst [vmem:[#allocation5 + $0x310] sm:$0xff] %v1366_v18  ;;  %1495 = vst [vmem:[#allocation5 + $0x318] sm:$0xff] %v1367_v51 }
 0x3c8   :  { %1500 = vst [vmem:[#allocation5 + $0x340] sm:$0xff] %v1372_v52  ;;  %1501 = vst [vmem:[#allocation5 + $0x348] sm:$0xff] %v1373_v14  ;;  %v1219_v0 = vpop.permute.xlu1 %1218  ;;  %v1231_v2 = vpop.permute.xlu0 %1230 }
 0x3c9   :  { %v1370_v8 = vmul.f32 %v1741_v7, %v1219_v0  ;;  %v1371_v11 = vmul.f32 %v1742_v10, %v1219_v0  ;;  %v1376_v53 = vmul.f32 %v1743_v24, %v1231_v2  ;;  %v1377_v23 = vmul.f32 %v1744_v36, %v1231_v2 }
 0x3cb   :  { %1498 = vst [vmem:[#allocation5 + $0x330] sm:$0xff] %v1370_v8  ;;  %1499 = vst [vmem:[#allocation5 + $0x338] sm:$0xff] %v1371_v11 }
 0x3cc   :  { %1504 = vst [vmem:[#allocation5 + $0x360] sm:$0xff] %v1376_v53  ;;  %1505 = vst [vmem:[#allocation5 + $0x368] sm:$0xff] %v1377_v23  ;;  %v1227_v37 = vpop.permute.xlu1 %1226  ;;  %v1239_v31 = vpop.permute.xlu0 %1238 }
 0x3cd   :  { %v1374_v32 = vmul.f32 %v1745_v9, %v1227_v37  ;;  %v1375_v41 = vmul.f32 %v1746_v55, %v1227_v37  ;;  %v1380_v19 = vmul.f32 %v1747_v54, %v1239_v31  ;;  %v1381_v26 = vmul.f32 %v1748_v60, %v1239_v31 }
 0x3cf   :  { %1502 = vst [vmem:[#allocation5 + $0x350] sm:$0xff] %v1374_v32  ;;  %1503 = vst [vmem:[#allocation5 + $0x358] sm:$0xff] %v1375_v41 }
 0x3d0   :  { %1508 = vst [vmem:[#allocation5 + $0x380] sm:$0xff] %v1380_v19  ;;  %1509 = vst [vmem:[#allocation5 + $0x388] sm:$0xff] %v1381_v26  ;;  %v1235_v17 = vpop.permute.xlu1 %1234  ;;  %v1247_v33 = vpop.permute.xlu0 %1246 }
 0x3d1   :  { %v1378_v16 = vmul.f32 %v1749_v25, %v1235_v17  ;;  %v1379_v56 = vmul.f32 %v1750_v21, %v1235_v17  ;;  %v1384_v35 = vmul.f32 %v1751_v30, %v1247_v33  ;;  %v1385_v42 = vmul.f32 %v1752_v3, %v1247_v33 }
 0x3d3   :  { %1506 = vst [vmem:[#allocation5 + $0x370] sm:$0xff] %v1378_v16  ;;  %1507 = vst [vmem:[#allocation5 + $0x378] sm:$0xff] %v1379_v56 }
 0x3d4   :  { %1512 = vst [vmem:[#allocation5 + $0x3a0] sm:$0xff] %v1384_v35  ;;  %1513 = vst [vmem:[#allocation5 + $0x3a8] sm:$0xff] %v1385_v42  ;;  %v1243_v29 = vpop.permute.xlu1 %1242  ;;  %v1255_v27 = vpop.permute.xlu0 %1254 }
 0x3d5   :  { %v1382_v34 = vmul.f32 %v1753_v57, %v1243_v29  ;;  %v1383_v5 = vmul.f32 %v1754_v12, %v1243_v29  ;;  %v1388_v22 = vmul.f32 %v1755_v43, %v1255_v27  ;;  %v1389_v38 = vmul.f32 %v1756_v4, %v1255_v27 }
 0x3d7   :  { %1510 = vst [vmem:[#allocation5 + $0x390] sm:$0xff] %v1382_v34  ;;  %1511 = vst [vmem:[#allocation5 + $0x398] sm:$0xff] %v1383_v5 }
 0x3d8   :  { %1516 = vst [vmem:[#allocation5 + $0x3c0] sm:$0xff] %v1388_v22  ;;  %1517 = vst [vmem:[#allocation5 + $0x3c8] sm:$0xff] %v1389_v38  ;;  %v1251_v40 = vpop.permute.xlu1 %1250  ;;  %v1263_v63 = vpop.permute.xlu0 %1262 }
 0x3d9   :  { %v1386_v44 = vmul.f32 %v1757_v58, %v1251_v40  ;;  %v1387_v15 = vmul.f32 %v1758_v6, %v1251_v40  ;;  %v1392_v59 = vmul.f32 %v1759_v39, %v1263_v63  ;;  %v1393_v45 = vmul.f32 %v1760_v46, %v1263_v63 }
 0x3db   :  { %1514 = vst [vmem:[#allocation5 + $0x3b0] sm:$0xff] %v1386_v44  ;;  %1515 = vst [vmem:[#allocation5 + $0x3b8] sm:$0xff] %v1387_v15 }
 0x3dc   :  { %1520 = vst [vmem:[#allocation5 + $0x3e0] sm:$0xff] %v1392_v59  ;;  %1521 = vst [vmem:[#allocation5 + $0x3e8] sm:$0xff] %v1393_v45  ;;  %v1259_v47 = vpop.permute.xlu1 %1258 }
 0x3dd   :  { %v1390_v48 = vmul.f32 %v1761_v13, %v1259_v47  ;;  %v1391_v49 = vmul.f32 %v1762_v20, %v1259_v47 }
 0x3df   :  { %1518 = vst [vmem:[#allocation5 + $0x3d0] sm:$0xff] %v1390_v48  ;;  %1519 = vst [vmem:[#allocation5 + $0x3d8] sm:$0xff] %v1391_v49 }
 0x3e0   :  { %v1267_v50 = vpop.permute.xlu1 %1266 }
 0x3e1   :  { %v1394_v18 = vmul.f32 %v1763_v61, %v1267_v50  ;;  %v1395_v51 = vmul.f32 %v1764_v28, %v1267_v50 }
 0x3e3   :  { %1522 = vst [vmem:[#allocation5 + $0x3f0] sm:$0xff] %v1394_v18  ;;  %1523 = vst [vmem:[#allocation5 + $0x3f8] sm:$0xff] %v1395_v51 }
 0x3e4   :  { %1798 = shalt.err (!%p1795_p12)
}
 0x3e5   :  { %s1799_s9 = scalar_lea.hbm %s2284_s3, 16384 }
 0x3e6   :  { %p1800_p13 = scmp.ne.s32.totalorder %s2284_s3, %s1799_s9  ;;  %p1803_p0 = scmp.lt.u32.totalorder %s1799_s9, %s2284_s3 }
 0x3e8   :  { %p1805_p1 = pnand %p1803_p0, %p1800_p13 }
 0x3ea   :  { %1808 = shalt.err (!%p1805_p1)
}
 0x3eb   :  { %1535 = dma.vmem_to_hbm [thread:$0]  %s1530_s5, 16384, %s2284_s3, [#allocation4], %s1814_s22, %s1814_s22, %s1815_s23  }
 0x3ec   :  { %1811 = dma.done.wait [#allocation4], 16384  }
 0x3ed   :  { %1812 = vsyncadd [#allocation4], 4294950912 }
 0x3ee   :  { %1539 = vsyncpa [#allocation3], 1 }
 0x3ef   :  { %1540 = vsyncpa [#allocation4], 1 }

</bundles_post_ra>
